<compile_context>
chip_gen: v7x
topology: tpu7x:2x2x1
jax: 0.10.0
libtpu: 0.0.40
codegen_flags: <defaults>
</compile_context>

<pallas_src>
import functools

import jax
import jax.numpy as jnp
from jax import lax
from jax.experimental import pallas as pl
from jax.experimental.pallas import tpu as pltpu

jax.config.update("jax_default_matmul_precision", "highest")


# ---------------------------------------------------------------------------
# Pallas kernels
# ---------------------------------------------------------------------------
def _se_reduce_gate_kernel(x_ref, w1_ref, w2_ref, gate_ref, acc_ref,
                           *, h_total, th, inv_hw, needs_mask):
    """Pass 1: accumulate x over H tiles; on the last tile reduce to the mean
       and compute gate = sigmoid(relu(mean @ W1) @ W2).

       x_ref:    (1, C, TH, W)  current H tile (NCHW)
       w1_ref:   (C, C//r)      conv1 weight as a matmul operand
       w2_ref:   (C//r, C)      conv2 weight as a matmul operand
       gate_ref: (1, 1, C)      output gate for this batch element (f32)
       acc_ref:  (C, TH, W) f32 VMEM tile accumulator (pure VPU adds per step)
    """
    hidx = pl.program_id(1)

    @pl.when(hidx == 0)
    def _():
        acc_ref[...] = jnp.zeros_like(acc_ref)

    x = x_ref[0].astype(jnp.float32)                      # (C, TH, W)
    if needs_mask:                                        # zero rows past H on the tail tile
        row = lax.broadcasted_iota(jnp.int32, (1, th, 1), 1)
        x = jnp.where(row < (h_total - hidx * th), x, 0.0)
    acc_ref[...] += x

    @pl.when(hidx == pl.num_programs(1) - 1)
    def _():
        # One cross-lane reduction per image (not per tile): (C, TH, W) -> (C,)
        s = jnp.sum(jnp.sum(acc_ref[...], axis=-1), axis=-1)        # (C,)
        m = s[None, :] * inv_hw                                      # (1, C) mean
        hid = jnp.maximum(
            jnp.dot(m, w1_ref[...], preferred_element_type=jnp.float32), 0.0)
        g = jax.nn.sigmoid(
            jnp.dot(hid, w2_ref[...], preferred_element_type=jnp.float32))   # (1, C)
        gate_ref[0] = g.astype(gate_ref.dtype)


def _se_scale_kernel(x_ref, gate_ref, o_ref):
    """Pass 2: out = x * gate (per-channel scale, broadcast over H, W).

       x_ref/o_ref: (1, C, TH, W)
       gate_ref:    (1, C, 1, 1) f32
    """
    x = x_ref[...].astype(jnp.float32)
    g = gate_ref[...]                                     # (1, C, 1, 1)
    o_ref[...] = (x * g).astype(o_ref.dtype)


# ---------------------------------------------------------------------------
# Pallas wrapper
# ---------------------------------------------------------------------------
def se_block_pallas(x_nchw, w1_oihw, w2_oihw, *, block_h=None):
    """SEBlock forward.

    x_nchw : (N, C, H, W)
    w1_oihw: (C//r, C, 1, 1)   PyTorch Conv2d weight (bias=False)
    w2_oihw: (C, C//r, 1, 1)   PyTorch Conv2d weight (bias=False)
    """
    n, c, h, w = x_nchw.shape
    cr = w1_oihw.shape[0]

    w1 = jnp.transpose(w1_oihw[:, :, 0, 0], (1, 0))       # (C, C//r)
    w2 = jnp.transpose(w2_oihw[:, :, 0, 0], (1, 0))       # (C//r, C)

    # H tile: target ~2 MiB per x block (near the HBM roofline, fits default
    # scoped VMEM with double buffering + the f32 accumulator on all chips).
    itemsize = jnp.dtype(x_nchw.dtype).itemsize
    if block_h is None:
        bytes_per_row = max(c * w * itemsize, 1)
        block_h = (2 * 1024 * 1024) // bytes_per_row
    block_h = int(block_h)
    sub = 8 * max(1, 4 // itemsize)                       # native sublane tile
    if block_h >= h:
        block_h = h
    else:
        block_h = max(sub, (block_h // sub) * sub)
        block_h = min(block_h, h)
    n_h = pl.cdiv(h, block_h)
    needs_mask = (h % block_h) != 0

    x_spec = pl.BlockSpec((1, c, block_h, w), lambda i, j: (i, 0, j, 0))

    # ---- Pass 1: H-tiled sum + fused tiny FCs -> (N, 1, C) gate (f32) ----
    gate = pl.pallas_call(
        functools.partial(_se_reduce_gate_kernel, h_total=h, th=block_h,
                          inv_hw=1.0 / float(h * w), needs_mask=needs_mask),
        out_shape=jax.ShapeDtypeStruct((n, 1, c), jnp.float32),
        grid=(n, n_h),
        in_specs=[
            x_spec,
            pl.BlockSpec((c, cr), lambda i, j: (0, 0)),
            pl.BlockSpec((cr, c), lambda i, j: (0, 0)),
        ],
        out_specs=pl.BlockSpec((1, 1, c), lambda i, j: (i, 0, 0)),
        scratch_shapes=[pltpu.VMEM((c, block_h, w), jnp.float32)],
        compiler_params=pltpu.CompilerParams(
            dimension_semantics=("parallel", "arbitrary")),
    )(x_nchw, w1, w2)

    # (N, 1, C) -> (N, C, 1, 1): identical row-major order, free reshape.
    gate4 = gate.reshape(n, c, 1, 1)

    # ---- Pass 2: H-tiled per-channel scale, fully parallel grid ----
    y = pl.pallas_call(
        _se_scale_kernel,
        out_shape=jax.ShapeDtypeStruct(x_nchw.shape, x_nchw.dtype),
        grid=(n, n_h),
        in_specs=[
            x_spec,
            pl.BlockSpec((1, c, 1, 1), lambda i, j: (i, 0, 0, 0)),
        ],
        out_specs=x_spec,
        compiler_params=pltpu.CompilerParams(
            dimension_semantics=("parallel", "parallel")),
    )(x_nchw, gate4)

    return y


# ---------------------------------------------------------------------------
# Pure-JAX reference (NCHW, PyTorch-layout weights) for verification
# ---------------------------------------------------------------------------
def se_block_ref(x, w1, w2):
    m = jnp.mean(x.astype(jnp.float32), axis=(2, 3), keepdims=True)
    hid = jax.nn.relu(lax.conv_general_dilated(
        m, w1, (1, 1), "VALID", dimension_numbers=("NCHW", "OIHW", "NCHW")))
    g = jax.nn.sigmoid(lax.conv_general_dilated(
        hid, w2, (1, 1), "VALID", dimension_numbers=("NCHW", "OIHW", "NCHW")))
    return (x.astype(jnp.float32) * g).astype(x.dtype)


# ---------------------------------------------------------------------------
if __name__ == "__main__":
    key = jax.random.PRNGKey(0)
    kx, k1, k2 = jax.random.split(key, 3)

    # H=20 with block_h=8 exercises the masked tail tile.
    N, C, H, W, R = 2, 64, 20, 16, 8
    x = jax.random.normal(kx, (N, C, H, W), jnp.float32)
    w1 = 0.1 * jax.random.normal(k1, (C // R, C, 1, 1), jnp.float32)   # conv1 (bias=False)
    w2 = 0.1 * jax.random.normal(k2, (C, C // R, 1, 1), jnp.float32)   # conv2 (bias=False)

    out = jax.block_until_ready(se_block_pallas(x, w1, w2, block_h=8))
    assert out.shape == x.shape, out.shape

    ref = jax.block_until_ready(se_block_ref(x, w1, w2))
    err = float(jnp.max(jnp.abs(out - ref)))
    scale = float(jnp.max(jnp.abs(ref))) + 1e-8
    assert err <= 1e-4 * scale + 1e-5, (err, scale)

    print("KERNEL_OK")
</pallas_src>

<mosaic_0001>
module attributes {stable_mosaic.version = 11 : i64} {
  func.func @_se_reduce_gate_kernel(%arg0: i32, %arg1: i32, %arg2: memref<1x64x8x16xf32, #tpu.memory_space<vmem>>, %arg3: memref<64x8xf32, #tpu.memory_space<vmem>>, %arg4: memref<8x64xf32, #tpu.memory_space<vmem>>, %arg5: memref<1x1x64xf32, #tpu.memory_space<vmem>>, %arg6: memref<64x8x16xf32, #tpu.memory_space<vmem>>) attributes {dimension_semantics = [#tpu.dimension_semantics<parallel>, #tpu.dimension_semantics<arbitrary>], iteration_bounds = array<i64: 2, 3>, scalar_prefetch = 0 : i64, scratch_operands = 1 : i64, tpu.core_type = #tpu.core_type<tc>, window_params = [{transform_indices = @transform_0, window_bounds = array<i64: 1, 64, 8, 16>}, {pipeline_mode = #tpu.pipeline_mode<synchronous>, transform_indices = @transform_1, window_bounds = array<i64: 64, 8>}, {pipeline_mode = #tpu.pipeline_mode<synchronous>, transform_indices = @transform_2, window_bounds = array<i64: 8, 64>}, {transform_indices = @transform_3, window_bounds = array<i64: 1, 1, 64>}]} {
    %c0_i32 = arith.constant 0 : i32
    %0 = arith.cmpi eq, %arg1, %c0_i32 : i32
    %1 = arith.extui %0 : i1 to i32
    %c0_i32_0 = arith.constant 0 : i32
    %2 = arith.cmpi ne, %1, %c0_i32_0 : i32
    scf.if %2 {
      %cst_11 = arith.constant 0.000000e+00 : f32
      %20 = vector.broadcast %cst_11 : f32 to vector<64x8x16xf32>
      %c0_12 = arith.constant 0 : index
      %c0_13 = arith.constant 0 : index
      %c0_14 = arith.constant 0 : index
      %21 = vector.load %arg6[%c0_12, %c0_13, %c0_14] : memref<64x8x16xf32, #tpu.memory_space<vmem>>, vector<64x8x16xf32>
      tpu.vector_store %arg6[%c0_12, %c0_13, %c0_14], %20 {strides = array<i32>} : memref<64x8x16xf32, #tpu.memory_space<vmem>>, vector<64x8x16xf32>,
    } else {
    }
    %c0 = arith.constant 0 : index
    %c0_1 = arith.constant 0 : index
    %c0_2 = arith.constant 0 : index
    %c0_3 = arith.constant 0 : index
    %3 = vector.load %arg2[%c0, %c0_1, %c0_2, %c0_3] : memref<1x64x8x16xf32, #tpu.memory_space<vmem>>, vector<1x64x8x16xf32>
    %4 = vector.shape_cast %3 : vector<1x64x8x16xf32> to vector<64x8x16xf32>
    %5 = tpu.iota {dimensions = array<i32: 1>} : vector<1x8x1xi32>
    %c8_i32 = arith.constant 8 : i32
    %6 = arith.muli %arg1, %c8_i32 : i32
    %c20_i32 = arith.constant 20 : i32
    %7 = arith.subi %c20_i32, %6 : i32
    %8 = vector.broadcast %7 : i32 to vector<1x8x1xi32>
    %9 = arith.cmpi slt, %5, %8 : vector<1x8x1xi32>
    %cst = arith.constant 0.000000e+00 : f32
    %10 = vector.shape_cast %9 : vector<1x8x1xi1> to vector<1x8x1xi1>
    %11 = vector.broadcast %10 : vector<1x8x1xi1> to vector<64x8x16xi1>
    %12 = vector.broadcast %cst : f32 to vector<64x8x16xf32>
    %13 = arith.select %11, %4, %12 : vector<64x8x16xi1>, vector<64x8x16xf32>
    %c0_4 = arith.constant 0 : index
    %c0_5 = arith.constant 0 : index
    %c0_6 = arith.constant 0 : index
    %14 = vector.load %arg6[%c0_4, %c0_5, %c0_6] : memref<64x8x16xf32, #tpu.memory_space<vmem>>, vector<64x8x16xf32>
    %15 = arith.addf %14, %13 : vector<64x8x16xf32>
    %c0_7 = arith.constant 0 : index
    %c0_8 = arith.constant 0 : index
    %c0_9 = arith.constant 0 : index
    %16 = vector.load %arg6[%c0_7, %c0_8, %c0_9] : memref<64x8x16xf32, #tpu.memory_space<vmem>>, vector<64x8x16xf32>
    tpu.vector_store %arg6[%c0_7, %c0_8, %c0_9], %15 {strides = array<i32>} : memref<64x8x16xf32, #tpu.memory_space<vmem>>, vector<64x8x16xf32>,
    %c2_i32 = arith.constant 2 : i32
    %17 = arith.cmpi eq, %arg1, %c2_i32 : i32
    %18 = arith.extui %17 : i1 to i32
    %c0_i32_10 = arith.constant 0 : i32
    %19 = arith.cmpi ne, %18, %c0_i32_10 : i32
    scf.if %19 {
      %c0_11 = arith.constant 0 : index
      %c0_12 = arith.constant 0 : index
      %c0_13 = arith.constant 0 : index
      %20 = vector.load %arg6[%c0_11, %c0_12, %c0_13] : memref<64x8x16xf32, #tpu.memory_space<vmem>>, vector<64x8x16xf32>
      %cst_14 = arith.constant dense<0.000000e+00> : vector<64x8xf32>
      %21 = vector.multi_reduction <add>, %20, %cst_14 [2] : vector<64x8x16xf32> to vector<64x8xf32>
      %cst_15 = arith.constant dense<0.000000e+00> : vector<64xf32>
      %22 = vector.multi_reduction <add>, %21, %cst_15 [1] : vector<64x8xf32> to vector<64xf32>
      %23 = vector.shape_cast %22 : vector<64xf32> to vector<1x64xf32>
      %cst_16 = arith.constant 3.125000e-03 : f32
      %24 = vector.broadcast %cst_16 : f32 to vector<1x64xf32>
      %25 = arith.mulf %23, %24 : vector<1x64xf32>
      %c0_17 = arith.constant 0 : index
      %c0_18 = arith.constant 0 : index
      %26 = vector.load %arg3[%c0_17, %c0_18] : memref<64x8xf32, #tpu.memory_space<vmem>>, vector<64x8xf32>
      %cst_19 = arith.constant dense<0.000000e+00> : vector<1x8xf32>
      %27 = tpu.matmul %25, %26, %cst_19 {dimension_numbers = #tpu.dot_dimension_numbers<[1], [0], [0], [1], [0, 0, 1, 1], [], []>, precision = #tpu.contract_precision<fp32>} : vector<1x64xf32>, vector<64x8xf32>, vector<1x8xf32> -> vector<1x8xf32>
      %cst_20 = arith.constant 0.000000e+00 : f32
      %28 = vector.broadcast %cst_20 : f32 to vector<1x8xf32>
      %29 = arith.maximumf %27, %28 : vector<1x8xf32>
      %c0_21 = arith.constant 0 : index
      %c0_22 = arith.constant 0 : index
      %30 = vector.load %arg4[%c0_21, %c0_22] : memref<8x64xf32, #tpu.memory_space<vmem>>, vector<8x64xf32>
      %cst_23 = arith.constant dense<0.000000e+00> : vector<1x64xf32>
      %31 = tpu.matmul %29, %30, %cst_23 {dimension_numbers = #tpu.dot_dimension_numbers<[1], [0], [0], [1], [0, 0, 1, 1], [], []>, precision = #tpu.contract_precision<fp32>} : vector<1x8xf32>, vector<8x64xf32>, vector<1x64xf32> -> vector<1x64xf32>
      %32 = arith.negf %31 : vector<1x64xf32>
      %33 = math.exp %32 : vector<1x64xf32>
      %cst_24 = arith.constant 1.000000e+00 : f32
      %34 = vector.broadcast %cst_24 : f32 to vector<1x64xf32>
      %35 = arith.addf %34, %33 : vector<1x64xf32>
      %36 = arith.divf %34, %35 : vector<1x64xf32>
      %c0_25 = arith.constant 0 : index
      %c0_26 = arith.constant 0 : index
      %c0_27 = arith.constant 0 : index
      %37 = vector.load %arg5[%c0_25, %c0_26, %c0_27] : memref<1x1x64xf32, #tpu.memory_space<vmem>>, vector<1x1x64xf32>
      %38 = vector.shape_cast %37 : vector<1x1x64xf32> to vector<1x64xf32>
      %39 = vector.shape_cast %36 : vector<1x64xf32> to vector<1x1x64xf32>
      tpu.vector_store %arg5[%c0_25, %c0_26, %c0_27], %39 {strides = array<i32>} : memref<1x1x64xf32, #tpu.memory_space<vmem>>, vector<1x1x64xf32>,
    } else {
    }
    return
  }
  func.func @transform_0(%arg0: i32, %arg1: i32) -> (i32, i32, i32, i32) {
    %c0_i32 = arith.constant 0 : i32
    %c0_i32_0 = arith.constant 0 : i32
    %c0_i32_1 = arith.constant 0 : i32
    return %arg0, %c0_i32, %arg1, %c0_i32_0 : i32, i32, i32, i32
  }
  func.func @transform_1(%arg0: i32, %arg1: i32) -> (i32, i32) {
    %c0_i32 = arith.constant 0 : i32
    %c0_i32_0 = arith.constant 0 : i32
    %c0_i32_1 = arith.constant 0 : i32
    return %c0_i32, %c0_i32_0 : i32, i32
  }
  func.func @transform_2(%arg0: i32, %arg1: i32) -> (i32, i32) {
    %c0_i32 = arith.constant 0 : i32
    %c0_i32_0 = arith.constant 0 : i32
    %c0_i32_1 = arith.constant 0 : i32
    return %c0_i32, %c0_i32_0 : i32, i32
  }
  func.func @transform_3(%arg0: i32, %arg1: i32) -> (i32, i32, i32) {
    %c0_i32 = arith.constant 0 : i32
    %c0_i32_0 = arith.constant 0 : i32
    %c0_i32_1 = arith.constant 0 : i32
    return %arg0, %c0_i32, %c0_i32_0 : i32, i32, i32
  }
}

</mosaic_0001>

<bundles_post_ra>
// kernel: tpu_custom_call.1
= control target key start
LH: loop header
LB: loop body
LE: loop exit
PB: predicated region body
PF: predicated region fallthrough
CT: control target
= control target key end

     0   :  { %8 = vsyncpa [#allocation5], 0  ;;  %s4387_s0 = inlined_call_operand.vmem [shape: f32[2,64,20,16], index: 0, kind: input, shape index: {}]   ;;  %s4388_s1 = inlined_call_operand.vmem [shape: f32[64,8], index: 1, kind: input, shape index: {}]   ;;  %s4389_s2 = inlined_call_operand.vmem [shape: f32[8,64], index: 2, kind: input, shape index: {}]   ;;  %s4390_s3 = inlined_call_operand.hbm [shape: f32[2,1,64], index: 3, kind: output, shape index: {}]  }
   0x1   :  { %10 = vsyncpa [#allocation5 + $0x1], 0  ;;  %s3258_s12 = smov 0   ;;  %s3260_s13 = smov 0  }
   0x2   :  { %s3262_s14 = smov 0   ;;  %s3264_s15 = smov 0  }
   0x3   :  { %s3266_s16 = smov 0   ;;  %s3268_s17 = smov 0  }
   0x4   :  { %s3270_s18 = smov 0   ;;  %s3272_s19 = smov 0  }
   0x5   :  { %s3274_s20 = smov 0   ;;  %s3276_s21 = smov 0  }
   0x6 LB: > { %s2709_s22 = sadd.s32 4294967295, %s3231_s21   ;;  %s2710_s23 = sadd.s32 4294967294, %s3231_s21   ;;  %s3231_s21 = sphi %s3276_s21, %s16_s21   ;;  %s3227_s20 = sphi %s3274_s20, %s4404_s20   ;;  %s3223_s19 = sphi %s3272_s19, %s4403_s19   ;;  %s3219_s18 = sphi %s3270_s18, %s4402_s18   ;;  %s3215_s17 = sphi %s3268_s17, %s4401_s17   ;;  %s3211_s16 = sphi %s3266_s16, %s4400_s16   ;;  %s3207_s15 = sphi %s3264_s15, %s4399_s15   ;;  %s3203_s14 = sphi %s3262_s14, %s4398_s14   ;;  %s3199_s13 = sphi %s3260_s13, %s4397_s13   ;;  %s3195_s12 = sphi %s3258_s12, %s4396_s12  }
   0x7   : > { %s25_s24 = sadd.s32 1, %s3223_s19  ;;  %s28_s25 = sadd.s32 1, %s3227_s20 }
   0x8   : > { %p26_p0 = scmp.ge.s32.totalorder %s25_s24, 3  ;;  %s37_s26 = sadd.s32 1, %s3211_s16 }
   0x9   : > { %p44_p1 = scmp.ne.s32.totalorder %s3211_s16, %s3207_s15  ;;  %p45_p2 = scmp.eq.s32.totalorder %s3231_s21, 0 }
   0xa   : > { %s4406_s24 = smov (%p26_p0, %s25_s24), 0  ;;  %s4408_s25 = smov (!%p26_p0, %s28_s25), %s3227_s20 }
   0xb   : > { %s33_s27 = ssub.s32 %s3223_s19, %s4406_s24  ;;  %p3321_p3 = por %p45_p2, %p44_p1 }
   0xc   : > { %p30_p4 = scmp.ge.s32.totalorder %s4408_s25, 2  ;;  %s105_s29 = sadd.s32 1, %s3203_s14 }
   0xd   : > { %p115_p5 = scmp.ne.s32.totalorder %s3203_s14, %s3199_s13  ;;  %p116_p6 = scmp.eq.s32.totalorder %s2709_s22, 5 }
   0xe   : > { %s4410_s25 = smov (%p30_p4, %s4408_s25), 0  ;;  %p121_p8 = scmp.ne.s32.totalorder %s3199_s13, %s3195_s12 }
   0xf   : > { %p3330_p7 = por %p116_p6, %p115_p5  ;;  %s32_s4 = ssub.s32 %s3227_s20, %s4410_s25 }
  0x10   : > { %p122_p9 = scmp.eq.s32.totalorder %s2710_s23, 5  ;;  %s34_s5 = sor.u32 %s33_s27, %s32_s4 }
  0x11   : > { %p103_p10 = scmp.eq.s32.totalorder %s32_s4, 0  ;;  %p35_p11 = scmp.eq.s32.totalorder %s34_s5, 0 }
  0x12   : > { %p3338_p12 = por %p122_p9, %p121_p8  ;;  %p2712_p13 = scmp.ge.s32.totalorder %s3231_s21, 6 }
  0x13   : > { %s3343_s7 = scalar_select %p103_p10, %s3203_s14, %s105_s29  }
  0x14   : > { %s3346_s8 = scalar_select %p35_p11, %s3211_s16, %s37_s26  }
  0x15   : > { %144 = sbr.rel (%p2712_p13) target bundleno = 67 (0x43), region = 24 }
  0x1c   : > { %147 = sbr.rel (!%p3321_p3) target bundleno = 67 (0x43), region = 28  ;;  %s149_s9 = sand.u32 (%p3321_p3), 1, %s3211_s16  }
  0x1d   : > { %s3025_s10 = smul.u32 (%p3321_p3), 192, %s3227_s20  ;;  %s2713_s11 = sshll.u32 (%p3321_p3), %s149_s9, 9 }
  0x1e   : > { %s3362_s26 = scalar_lea.vmem (%p3321_p3), [#allocation3], %s2713_s11 }
  0x1f   : > { %s153_s22 = sadd.s32 (%p3321_p3), %s3223_s19, %s3025_s10 }
  0x20   : > { %s2714_s23 = sshll.u32 (%p3321_p3), %s153_s22, 3 }
  0x21   : > { %s3357_s29 = scalar_lea.vmem (%p3321_p3), %s4387_s0, %s2714_s23 }
  0x22   : > { %v309_v0 = vld [vmem:[%s3357_s29] sm:$0xff] (%p3321_p3)  ;;  %v311_v1 = vld [vmem:[%s3357_s29 + $0x18] sm:$0xff] (%p3321_p3)  ;;  %v313_v2 = vld [vmem:[%s3357_s29 + $0x30] sm:$0xff] (%p3321_p3) }
  0x23   : > { %310 = vst [vmem:[%s3362_s26] sm:$0xff] %v309_v0  ;;  %312 = vst [vmem:[%s3362_s26 + $0x8] sm:$0xff] %v311_v1  ;;  %v315_v3 = vld [vmem:[%s3357_s29 + $0x48] sm:$0xff]  ;;  %v317_v4 = vld [vmem:[%s3357_s29 + $0x60] sm:$0xff] }
  0x24   : > { %314 = vst [vmem:[%s3362_s26 + $0x10] sm:$0xff] %v313_v2  ;;  %v319_v5 = vld [vmem:[%s3357_s29 + $0x78] sm:$0xff]  ;;  %316 = vst [vmem:[%s3362_s26 + $0x18] sm:$0xff] %v315_v3  ;;  %v321_v6 = vld [vmem:[%s3357_s29 + $0x90] sm:$0xff] }
  0x25   : > { %318 = vst [vmem:[%s3362_s26 + $0x20] sm:$0xff] %v317_v4  ;;  %320 = vst [vmem:[%s3362_s26 + $0x28] sm:$0xff] %v319_v5  ;;  %v323_v7 = vld [vmem:[%s3357_s29 + $0xa8] sm:$0xff]  ;;  %v325_v8 = vld [vmem:[%s3357_s29 + $0xc0] sm:$0xff] }
  0x26   : > { %322 = vst [vmem:[%s3362_s26 + $0x30] sm:$0xff] %v321_v6  ;;  %324 = vst [vmem:[%s3362_s26 + $0x38] sm:$0xff] %v323_v7  ;;  %v327_v9 = vld [vmem:[%s3357_s29 + $0xd8] sm:$0xff]  ;;  %v329_v10 = vld [vmem:[%s3357_s29 + $0xf0] sm:$0xff] }
  0x27   : > { %326 = vst [vmem:[%s3362_s26 + $0x40] sm:$0xff] %v325_v8  ;;  %v331_v11 = vld [vmem:[%s3357_s29 + $0x108] sm:$0xff]  ;;  %328 = vst [vmem:[%s3362_s26 + $0x48] sm:$0xff] %v327_v9  ;;  %v333_v12 = vld [vmem:[%s3357_s29 + $0x120] sm:$0xff] }
  0x28   : > { %330 = vst [vmem:[%s3362_s26 + $0x50] sm:$0xff] %v329_v10  ;;  %332 = vst [vmem:[%s3362_s26 + $0x58] sm:$0xff] %v331_v11  ;;  %v335_v13 = vld [vmem:[%s3357_s29 + $0x138] sm:$0xff]  ;;  %v337_v14 = vld [vmem:[%s3357_s29 + $0x150] sm:$0xff] }
  0x29   : > { %334 = vst [vmem:[%s3362_s26 + $0x60] sm:$0xff] %v333_v12  ;;  %336 = vst [vmem:[%s3362_s26 + $0x68] sm:$0xff] %v335_v13  ;;  %v339_v15 = vld [vmem:[%s3357_s29 + $0x168] sm:$0xff]  ;;  %v341_v16 = vld [vmem:[%s3357_s29 + $0x180] sm:$0xff] }
  0x2a   : > { %338 = vst [vmem:[%s3362_s26 + $0x70] sm:$0xff] %v337_v14  ;;  %v343_v17 = vld [vmem:[%s3357_s29 + $0x198] sm:$0xff]  ;;  %340 = vst [vmem:[%s3362_s26 + $0x78] sm:$0xff] %v339_v15  ;;  %v345_v18 = vld [vmem:[%s3357_s29 + $0x1b0] sm:$0xff] }
  0x2b   : > { %342 = vst [vmem:[%s3362_s26 + $0x80] sm:$0xff] %v341_v16  ;;  %344 = vst [vmem:[%s3362_s26 + $0x88] sm:$0xff] %v343_v17  ;;  %v347_v19 = vld [vmem:[%s3357_s29 + $0x1c8] sm:$0xff]  ;;  %v349_v20 = vld [vmem:[%s3357_s29 + $0x1e0] sm:$0xff] }
  0x2c   : > { %346 = vst [vmem:[%s3362_s26 + $0x90] sm:$0xff] %v345_v18  ;;  %348 = vst [vmem:[%s3362_s26 + $0x98] sm:$0xff] %v347_v19  ;;  %v351_v21 = vld [vmem:[%s3357_s29 + $0x1f8] sm:$0xff]  ;;  %v353_v22 = vld [vmem:[%s3357_s29 + $0x210] sm:$0xff] }
  0x2d   : > { %350 = vst [vmem:[%s3362_s26 + $0xa0] sm:$0xff] %v349_v20  ;;  %v355_v23 = vld [vmem:[%s3357_s29 + $0x228] sm:$0xff]  ;;  %352 = vst [vmem:[%s3362_s26 + $0xa8] sm:$0xff] %v351_v21  ;;  %v357_v24 = vld [vmem:[%s3357_s29 + $0x240] sm:$0xff] }
  0x2e   : > { %354 = vst [vmem:[%s3362_s26 + $0xb0] sm:$0xff] %v353_v22  ;;  %356 = vst [vmem:[%s3362_s26 + $0xb8] sm:$0xff] %v355_v23  ;;  %v359_v25 = vld [vmem:[%s3357_s29 + $0x258] sm:$0xff]  ;;  %v361_v26 = vld [vmem:[%s3357_s29 + $0x270] sm:$0xff] }
  0x2f   : > { %358 = vst [vmem:[%s3362_s26 + $0xc0] sm:$0xff] %v357_v24  ;;  %360 = vst [vmem:[%s3362_s26 + $0xc8] sm:$0xff] %v359_v25  ;;  %v363_v27 = vld [vmem:[%s3357_s29 + $0x288] sm:$0xff]  ;;  %v365_v28 = vld [vmem:[%s3357_s29 + $0x2a0] sm:$0xff] }
  0x30   : > { %362 = vst [vmem:[%s3362_s26 + $0xd0] sm:$0xff] %v361_v26  ;;  %v367_v29 = vld [vmem:[%s3357_s29 + $0x2b8] sm:$0xff]  ;;  %364 = vst [vmem:[%s3362_s26 + $0xd8] sm:$0xff] %v363_v27  ;;  %v369_v30 = vld [vmem:[%s3357_s29 + $0x2d0] sm:$0xff] }
  0x31   : > { %366 = vst [vmem:[%s3362_s26 + $0xe0] sm:$0xff] %v365_v28  ;;  %368 = vst [vmem:[%s3362_s26 + $0xe8] sm:$0xff] %v367_v29  ;;  %v371_v31 = vld [vmem:[%s3357_s29 + $0x2e8] sm:$0xff]  ;;  %v373_v32 = vld [vmem:[%s3357_s29 + $0x300] sm:$0xff] }
  0x32   : > { %370 = vst [vmem:[%s3362_s26 + $0xf0] sm:$0xff] %v369_v30  ;;  %372 = vst [vmem:[%s3362_s26 + $0xf8] sm:$0xff] %v371_v31  ;;  %v375_v33 = vld [vmem:[%s3357_s29 + $0x318] sm:$0xff]  ;;  %v377_v34 = vld [vmem:[%s3357_s29 + $0x330] sm:$0xff] }
  0x33   : > { %374 = vst [vmem:[%s3362_s26 + $0x100] sm:$0xff] %v373_v32  ;;  %v379_v35 = vld [vmem:[%s3357_s29 + $0x348] sm:$0xff]  ;;  %376 = vst [vmem:[%s3362_s26 + $0x108] sm:$0xff] %v375_v33  ;;  %v381_v36 = vld [vmem:[%s3357_s29 + $0x360] sm:$0xff] }
  0x34   : > { %378 = vst [vmem:[%s3362_s26 + $0x110] sm:$0xff] %v377_v34  ;;  %380 = vst [vmem:[%s3362_s26 + $0x118] sm:$0xff] %v379_v35  ;;  %v383_v37 = vld [vmem:[%s3357_s29 + $0x378] sm:$0xff]  ;;  %v385_v38 = vld [vmem:[%s3357_s29 + $0x390] sm:$0xff] }
  0x35   : > { %382 = vst [vmem:[%s3362_s26 + $0x120] sm:$0xff] %v381_v36  ;;  %384 = vst [vmem:[%s3362_s26 + $0x128] sm:$0xff] %v383_v37  ;;  %v387_v39 = vld [vmem:[%s3357_s29 + $0x3a8] sm:$0xff]  ;;  %v389_v40 = vld [vmem:[%s3357_s29 + $0x3c0] sm:$0xff] }
  0x36   : > { %386 = vst [vmem:[%s3362_s26 + $0x130] sm:$0xff] %v385_v38  ;;  %v391_v41 = vld [vmem:[%s3357_s29 + $0x3d8] sm:$0xff]  ;;  %388 = vst [vmem:[%s3362_s26 + $0x138] sm:$0xff] %v387_v39  ;;  %v393_v42 = vld [vmem:[%s3357_s29 + $0x3f0] sm:$0xff] }
  0x37   : > { %390 = vst [vmem:[%s3362_s26 + $0x140] sm:$0xff] %v389_v40  ;;  %392 = vst [vmem:[%s3362_s26 + $0x148] sm:$0xff] %v391_v41  ;;  %v395_v43 = vld [vmem:[%s3357_s29 + $0x408] sm:$0xff]  ;;  %v397_v44 = vld [vmem:[%s3357_s29 + $0x420] sm:$0xff] }
  0x38   : > { %394 = vst [vmem:[%s3362_s26 + $0x150] sm:$0xff] %v393_v42  ;;  %396 = vst [vmem:[%s3362_s26 + $0x158] sm:$0xff] %v395_v43  ;;  %v399_v45 = vld [vmem:[%s3357_s29 + $0x438] sm:$0xff]  ;;  %v401_v46 = vld [vmem:[%s3357_s29 + $0x450] sm:$0xff] }
  0x39   : > { %398 = vst [vmem:[%s3362_s26 + $0x160] sm:$0xff] %v397_v44  ;;  %v403_v47 = vld [vmem:[%s3357_s29 + $0x468] sm:$0xff]  ;;  %400 = vst [vmem:[%s3362_s26 + $0x168] sm:$0xff] %v399_v45  ;;  %v405_v48 = vld [vmem:[%s3357_s29 + $0x480] sm:$0xff] }
  0x3a   : > { %402 = vst [vmem:[%s3362_s26 + $0x170] sm:$0xff] %v401_v46  ;;  %404 = vst [vmem:[%s3362_s26 + $0x178] sm:$0xff] %v403_v47  ;;  %v407_v49 = vld [vmem:[%s3357_s29 + $0x498] sm:$0xff]  ;;  %v409_v50 = vld [vmem:[%s3357_s29 + $0x4b0] sm:$0xff] }
  0x3b   : > { %406 = vst [vmem:[%s3362_s26 + $0x180] sm:$0xff] %v405_v48  ;;  %408 = vst [vmem:[%s3362_s26 + $0x188] sm:$0xff] %v407_v49  ;;  %v411_v51 = vld [vmem:[%s3357_s29 + $0x4c8] sm:$0xff]  ;;  %v413_v52 = vld [vmem:[%s3357_s29 + $0x4e0] sm:$0xff] }
  0x3c   : > { %410 = vst [vmem:[%s3362_s26 + $0x190] sm:$0xff] %v409_v50  ;;  %v415_v53 = vld [vmem:[%s3357_s29 + $0x4f8] sm:$0xff]  ;;  %412 = vst [vmem:[%s3362_s26 + $0x198] sm:$0xff] %v411_v51  ;;  %v417_v54 = vld [vmem:[%s3357_s29 + $0x510] sm:$0xff] }
  0x3d   : > { %414 = vst [vmem:[%s3362_s26 + $0x1a0] sm:$0xff] %v413_v52  ;;  %416 = vst [vmem:[%s3362_s26 + $0x1a8] sm:$0xff] %v415_v53  ;;  %v419_v55 = vld [vmem:[%s3357_s29 + $0x528] sm:$0xff]  ;;  %v421_v56 = vld [vmem:[%s3357_s29 + $0x540] sm:$0xff] }
  0x3e   : > { %418 = vst [vmem:[%s3362_s26 + $0x1b0] sm:$0xff] %v417_v54  ;;  %420 = vst [vmem:[%s3362_s26 + $0x1b8] sm:$0xff] %v419_v55  ;;  %v423_v57 = vld [vmem:[%s3357_s29 + $0x558] sm:$0xff]  ;;  %v425_v58 = vld [vmem:[%s3357_s29 + $0x570] sm:$0xff] }
  0x3f   : > { %422 = vst [vmem:[%s3362_s26 + $0x1c0] sm:$0xff] %v421_v56  ;;  %v427_v59 = vld [vmem:[%s3357_s29 + $0x588] sm:$0xff]  ;;  %424 = vst [vmem:[%s3362_s26 + $0x1c8] sm:$0xff] %v423_v57  ;;  %v429_v60 = vld [vmem:[%s3357_s29 + $0x5a0] sm:$0xff] }
  0x40   : > { %426 = vst [vmem:[%s3362_s26 + $0x1d0] sm:$0xff] %v425_v58  ;;  %428 = vst [vmem:[%s3362_s26 + $0x1d8] sm:$0xff] %v427_v59  ;;  %v431_v61 = vld [vmem:[%s3357_s29 + $0x5b8] sm:$0xff]  ;;  %v433_v62 = vld [vmem:[%s3357_s29 + $0x5d0] sm:$0xff] }
  0x41   : > { %430 = vst [vmem:[%s3362_s26 + $0x1e0] sm:$0xff] %v429_v60  ;;  %432 = vst [vmem:[%s3362_s26 + $0x1e8] sm:$0xff] %v431_v61  ;;  %v435_v63 = vld [vmem:[%s3357_s29 + $0x5e8] sm:$0xff] }
  0x42   : > { %434 = vst [vmem:[%s3362_s26 + $0x1f0] sm:$0xff] %v433_v62  ;;  %436 = vst [vmem:[%s3362_s26 + $0x1f8] sm:$0xff] %v435_v63 }
  0x43 PF: > { %p2715_p0 = scmp.ge.s32.totalorder %s3231_s21, 1  ;;  %p441_p1 = scmp.lt.s32.totalorder %s3231_s21, 7 }
  0x45   : > { %p442_p2 = pnand %p2715_p0, %p441_p1 }
  0x46   : > { %s448_s28 = sand.u32 (!%p442_p2), 1, %s3207_s15   ;;  %s468_s5 = sand.u32 (!%p442_p2), 1, %s3199_s13  }
  0x47   : > { %445 = sbr.rel (%p442_p2) target bundleno = 1165 (0x48d), region = 66  ;;  %s2716_s9 = sshll.u32 (!%p442_p2), %s448_s28, 9 }
  0x48   : > { %s3493_s10 = scalar_lea.vmem (!%p442_p2), [#allocation3], %s2716_s9  ;;  %s3497_s11 = scalar_lea.vmem (!%p442_p2), [#allocation4], %s468_s5 }
  0x49   : > { %p2717_p3 = scmp.ne.s32.totalorder (!%p442_p2), %s3215_s17, 0 }
  0x4e   : > { %473 = sbr.rel (%p2717_p3) target bundleno = 111 (0x6f), region = 74  ;;  %vm474_vm0 = vcmask (!%p2717_p3), 130048   ;;  %v3233_v0 = vmov (!%p2717_p3), 0.0  }
  0x4f   : > { %475 = vst.msk [vmem:[#allocation2] sm:$0xff] (!%p2717_p3), %vm474_vm0, %v3233_v0  ;;  %476 = vst.msk [vmem:[#allocation2 + $0x8] sm:$0xff] (!%p2717_p3), %vm474_vm0, %v3233_v0 }
  0x50   : > { %477 = vst.msk [vmem:[#allocation2 + $0x10] sm:$0xff] (!%p2717_p3), %vm474_vm0, %v3233_v0  ;;  %478 = vst.msk [vmem:[#allocation2 + $0x18] sm:$0xff] (!%p2717_p3), %vm474_vm0, %v3233_v0 }
  0x51   : > { %479 = vst.msk [vmem:[#allocation2 + $0x20] sm:$0xff] (!%p2717_p3), %vm474_vm0, %v3233_v0  ;;  %480 = vst.msk [vmem:[#allocation2 + $0x28] sm:$0xff] (!%p2717_p3), %vm474_vm0, %v3233_v0 }
  0x52   : > { %481 = vst.msk [vmem:[#allocation2 + $0x30] sm:$0xff] (!%p2717_p3), %vm474_vm0, %v3233_v0  ;;  %482 = vst.msk [vmem:[#allocation2 + $0x38] sm:$0xff] (!%p2717_p3), %vm474_vm0, %v3233_v0 }
  0x53   : > { %483 = vst.msk [vmem:[#allocation2 + $0x40] sm:$0xff] (!%p2717_p3), %vm474_vm0, %v3233_v0  ;;  %484 = vst.msk [vmem:[#allocation2 + $0x48] sm:$0xff] (!%p2717_p3), %vm474_vm0, %v3233_v0 }
  0x54   : > { %485 = vst.msk [vmem:[#allocation2 + $0x50] sm:$0xff] (!%p2717_p3), %vm474_vm0, %v3233_v0  ;;  %486 = vst.msk [vmem:[#allocation2 + $0x58] sm:$0xff] (!%p2717_p3), %vm474_vm0, %v3233_v0 }
  0x55   : > { %487 = vst.msk [vmem:[#allocation2 + $0x60] sm:$0xff] %vm474_vm0, %v3233_v0  ;;  %488 = vst.msk [vmem:[#allocation2 + $0x68] sm:$0xff] %vm474_vm0, %v3233_v0 }
  0x56   : > { %489 = vst.msk [vmem:[#allocation2 + $0x70] sm:$0xff] %vm474_vm0, %v3233_v0  ;;  %490 = vst.msk [vmem:[#allocation2 + $0x78] sm:$0xff] %vm474_vm0, %v3233_v0 }
  0x57   : > { %491 = vst.msk [vmem:[#allocation2 + $0x80] sm:$0xff] %vm474_vm0, %v3233_v0  ;;  %492 = vst.msk [vmem:[#allocation2 + $0x88] sm:$0xff] %vm474_vm0, %v3233_v0 }
  0x58   : > { %493 = vst.msk [vmem:[#allocation2 + $0x90] sm:$0xff] %vm474_vm0, %v3233_v0  ;;  %494 = vst.msk [vmem:[#allocation2 + $0x98] sm:$0xff] %vm474_vm0, %v3233_v0 }
  0x59   : > { %495 = vst.msk [vmem:[#allocation2 + $0xa0] sm:$0xff] %vm474_vm0, %v3233_v0  ;;  %496 = vst.msk [vmem:[#allocation2 + $0xa8] sm:$0xff] %vm474_vm0, %v3233_v0 }
  0x5a   : > { %497 = vst.msk [vmem:[#allocation2 + $0xb0] sm:$0xff] %vm474_vm0, %v3233_v0  ;;  %498 = vst.msk [vmem:[#allocation2 + $0xb8] sm:$0xff] %vm474_vm0, %v3233_v0 }
  0x5b   : > { %499 = vst.msk [vmem:[#allocation2 + $0xc0] sm:$0xff] %vm474_vm0, %v3233_v0  ;;  %500 = vst.msk [vmem:[#allocation2 + $0xc8] sm:$0xff] %vm474_vm0, %v3233_v0 }
  0x5c   : > { %501 = vst.msk [vmem:[#allocation2 + $0xd0] sm:$0xff] %vm474_vm0, %v3233_v0  ;;  %502 = vst.msk [vmem:[#allocation2 + $0xd8] sm:$0xff] %vm474_vm0, %v3233_v0 }
  0x5d   : > { %503 = vst.msk [vmem:[#allocation2 + $0xe0] sm:$0xff] %vm474_vm0, %v3233_v0  ;;  %504 = vst.msk [vmem:[#allocation2 + $0xe8] sm:$0xff] %vm474_vm0, %v3233_v0 }
  0x5e   : > { %505 = vst.msk [vmem:[#allocation2 + $0xf0] sm:$0xff] %vm474_vm0, %v3233_v0  ;;  %506 = vst.msk [vmem:[#allocation2 + $0xf8] sm:$0xff] %vm474_vm0, %v3233_v0 }
  0x5f   : > { %507 = vst.msk [vmem:[#allocation2 + $0x100] sm:$0xff] %vm474_vm0, %v3233_v0  ;;  %508 = vst.msk [vmem:[#allocation2 + $0x108] sm:$0xff] %vm474_vm0, %v3233_v0 }
  0x60   : > { %509 = vst.msk [vmem:[#allocation2 + $0x110] sm:$0xff] %vm474_vm0, %v3233_v0  ;;  %510 = vst.msk [vmem:[#allocation2 + $0x118] sm:$0xff] %vm474_vm0, %v3233_v0 }
  0x61   : > { %511 = vst.msk [vmem:[#allocation2 + $0x120] sm:$0xff] %vm474_vm0, %v3233_v0  ;;  %512 = vst.msk [vmem:[#allocation2 + $0x128] sm:$0xff] %vm474_vm0, %v3233_v0 }
  0x62   : > { %513 = vst.msk [vmem:[#allocation2 + $0x130] sm:$0xff] %vm474_vm0, %v3233_v0  ;;  %514 = vst.msk [vmem:[#allocation2 + $0x138] sm:$0xff] %vm474_vm0, %v3233_v0 }
  0x63   : > { %515 = vst.msk [vmem:[#allocation2 + $0x140] sm:$0xff] %vm474_vm0, %v3233_v0  ;;  %516 = vst.msk [vmem:[#allocation2 + $0x148] sm:$0xff] %vm474_vm0, %v3233_v0 }
  0x64   : > { %517 = vst.msk [vmem:[#allocation2 + $0x150] sm:$0xff] %vm474_vm0, %v3233_v0  ;;  %518 = vst.msk [vmem:[#allocation2 + $0x158] sm:$0xff] %vm474_vm0, %v3233_v0 }
  0x65   : > { %519 = vst.msk [vmem:[#allocation2 + $0x160] sm:$0xff] %vm474_vm0, %v3233_v0  ;;  %520 = vst.msk [vmem:[#allocation2 + $0x168] sm:$0xff] %vm474_vm0, %v3233_v0 }
  0x66   : > { %521 = vst.msk [vmem:[#allocation2 + $0x170] sm:$0xff] %vm474_vm0, %v3233_v0  ;;  %522 = vst.msk [vmem:[#allocation2 + $0x178] sm:$0xff] %vm474_vm0, %v3233_v0 }
  0x67   : > { %523 = vst.msk [vmem:[#allocation2 + $0x180] sm:$0xff] %vm474_vm0, %v3233_v0  ;;  %524 = vst.msk [vmem:[#allocation2 + $0x188] sm:$0xff] %vm474_vm0, %v3233_v0 }
  0x68   : > { %525 = vst.msk [vmem:[#allocation2 + $0x190] sm:$0xff] %vm474_vm0, %v3233_v0  ;;  %526 = vst.msk [vmem:[#allocation2 + $0x198] sm:$0xff] %vm474_vm0, %v3233_v0 }
  0x69   : > { %527 = vst.msk [vmem:[#allocation2 + $0x1a0] sm:$0xff] %vm474_vm0, %v3233_v0  ;;  %528 = vst.msk [vmem:[#allocation2 + $0x1a8] sm:$0xff] %vm474_vm0, %v3233_v0 }
  0x6a   : > { %529 = vst.msk [vmem:[#allocation2 + $0x1b0] sm:$0xff] %vm474_vm0, %v3233_v0  ;;  %530 = vst.msk [vmem:[#allocation2 + $0x1b8] sm:$0xff] %vm474_vm0, %v3233_v0 }
  0x6b   : > { %531 = vst.msk [vmem:[#allocation2 + $0x1c0] sm:$0xff] %vm474_vm0, %v3233_v0  ;;  %532 = vst.msk [vmem:[#allocation2 + $0x1c8] sm:$0xff] %vm474_vm0, %v3233_v0 }
  0x6c   : > { %533 = vst.msk [vmem:[#allocation2 + $0x1d0] sm:$0xff] %vm474_vm0, %v3233_v0  ;;  %534 = vst.msk [vmem:[#allocation2 + $0x1d8] sm:$0xff] %vm474_vm0, %v3233_v0 }
  0x6d   : > { %535 = vst.msk [vmem:[#allocation2 + $0x1e0] sm:$0xff] %vm474_vm0, %v3233_v0  ;;  %536 = vst.msk [vmem:[#allocation2 + $0x1e8] sm:$0xff] %vm474_vm0, %v3233_v0 }
  0x6e   : > { %537 = vst.msk [vmem:[#allocation2 + $0x1f0] sm:$0xff] %vm474_vm0, %v3233_v0  ;;  %538 = vst.msk [vmem:[#allocation2 + $0x1f8] sm:$0xff] %vm474_vm0, %v3233_v0 }
  0x6f PF: > { %v539_v1 = vld [vmem:[%s3493_s10] sm:$0xff]  ;;  %v603_v2 = vlaneseq  ;;  %s2718_s15 = sshll.u32 %s3215_s17, 3  ;;  %v540_v3 = vld [vmem:[%s3493_s10 + $0x8] sm:$0xff]  ;;  %v541_v6 = vld [vmem:[%s3493_s10 + $0x10] sm:$0xff]  ;;  %vm803_vm2 = vcmask 130048   ;;  %p2719_p4 = scmp.ne.s32.totalorder %s3215_s17, 2 }
  0x70   : > { %s606_s22 = ssub.s32 20, %s2718_s15  ;;  %v675_v4 = vld [vmem:[#allocation2] sm:$0xff]  ;;  %v676_v5 = vld [vmem:[#allocation2 + $0x8] sm:$0xff]  ;;  %v542_v10 = vld [vmem:[%s3493_s10 + $0x18] sm:$0xff]  ;;  %vm1450_vm3 = vcmask (!%p2719_p4), 1041409   ;;  %vm1452_vm4 = vcmask (!%p2719_p4), 1042434  }
  0x71   : > { %v677_v7 = vld [vmem:[#allocation2 + $0x10] sm:$0xff]  ;;  %v3633_v8 = vshrl.u32 %v603_v2, 7  ;;  %v607_v9 = vstv %s606_s22  ;;  %v678_v11 = vld [vmem:[#allocation2 + $0x18] sm:$0xff]  ;;  %v543_v12 = vld [vmem:[%s3493_s10 + $0x20] sm:$0xff]  ;;  %vm1454_vm5 = vcmask (!%p2719_p4), 1043459   ;;  %vm1456_vm6 = vcmask (!%p2719_p4), 1044484  }
  0x72   : > { %v679_v13 = vld [vmem:[#allocation2 + $0x20] sm:$0xff]  ;;  %v544_v14 = vld [vmem:[%s3493_s10 + $0x28] sm:$0xff]  ;;  %v545_v17 = vld [vmem:[%s3493_s10 + $0x30] sm:$0xff]  ;;  %vm1458_vm7 = vcmask (!%p2719_p4), 1045509   ;;  %vm1460_vm8 = vcmask (!%p2719_p4), 1046534   ;;  %vm1462_vm9 = vcmask (!%p2719_p4), 1047559  }
  0x73   : > { %v680_v15 = vld [vmem:[#allocation2 + $0x28] sm:$0xff]  ;;  %vm3639_vm1 = vcmp.lt.s32.totalorder %v3633_v8, %v607_v9  ;;  %v681_v18 = vld [vmem:[#allocation2 + $0x30] sm:$0xff]  ;;  %v546_v19 = vld [vmem:[%s3493_s10 + $0x38] sm:$0xff]  ;;  %vm1521_vm10 = vcmask (!%p2719_p4), 64512   ;;  %vm3235_vm11 = vmmov (!%p2719_p4), 0   ;;  %vm1579_vm12 = vcmask (!%p2719_p4), 130112  }
  0x74   : > { %v611_v20 = vsel %vm3639_vm1, %v539_v1, 0.0  ;;  %v612_v21 = vsel %vm3639_vm1, %v540_v3, 0.0  ;;  %v613_v22 = vsel %vm3639_vm1, %v541_v6, 0.0  ;;  %v614_v23 = vsel %vm3639_vm1, %v542_v10, 0.0  ;;  %v682_v24 = vld [vmem:[#allocation2 + $0x38] sm:$0xff]  ;;  %v547_v25 = vld [vmem:[%s3493_s10 + $0x40] sm:$0xff] }
  0x75   : > { %v739_v26 = vadd.f32 %v675_v4, %v611_v20  ;;  %v740_v27 = vadd.f32 %v676_v5, %v612_v21  ;;  %v741_v28 = vadd.f32 %v677_v7, %v613_v22  ;;  %v742_v29 = vadd.f32 %v678_v11, %v614_v23  ;;  %v683_v30 = vld [vmem:[#allocation2 + $0x40] sm:$0xff]  ;;  %v548_v31 = vld [vmem:[%s3493_s10 + $0x48] sm:$0xff]  ;;  %v549_v37 = vld [vmem:[%s3493_s10 + $0x50] sm:$0xff] }
  0x76   : > { %v684_v32 = vld [vmem:[#allocation2 + $0x48] sm:$0xff]  ;;  %v615_v33 = vsel %vm3639_vm1, %v543_v12, 0.0  ;;  %v616_v34 = vsel %vm3639_vm1, %v544_v14, 0.0  ;;  %v617_v35 = vsel %vm3639_vm1, %v545_v17, 0.0  ;;  %v618_v36 = vsel %vm3639_vm1, %v546_v19, 0.0  ;;  %v685_v38 = vld [vmem:[#allocation2 + $0x50] sm:$0xff] }
  0x77   : > { %804 = vst.msk [vmem:[#allocation2] sm:$0xff] %vm803_vm2, %v739_v26  ;;  %805 = vst.msk [vmem:[#allocation2 + $0x8] sm:$0xff] %vm803_vm2, %v740_v27  ;;  %v743_v39 = vadd.f32 %v679_v13, %v615_v33  ;;  %v744_v40 = vadd.f32 %v680_v15, %v616_v34  ;;  %v745_v41 = vadd.f32 %v681_v18, %v617_v35  ;;  %v550_v43 = vld [vmem:[%s3493_s10 + $0x58] sm:$0xff]  ;;  %v551_v45 = vld [vmem:[%s3493_s10 + $0x60] sm:$0xff]  ;;  %v619_v46 = vsel %vm3639_vm1, %v547_v25, 0.0 }
  0x78   : > { %806 = vst.msk [vmem:[#allocation2 + $0x10] sm:$0xff] %vm803_vm2, %v741_v28  ;;  %807 = vst.msk [vmem:[#allocation2 + $0x18] sm:$0xff] %vm803_vm2, %v742_v29  ;;  %v746_v42 = vadd.f32 %v682_v24, %v618_v36  ;;  %v686_v44 = vld [vmem:[#allocation2 + $0x58] sm:$0xff]  ;;  %v620_v47 = vsel %vm3639_vm1, %v548_v31, 0.0  ;;  %v621_v48 = vsel %vm3639_vm1, %v549_v37, 0.0  ;;  %v622_v49 = vsel %vm3639_vm1, %v550_v43, 0.0 }
  0x79   : > { %v687_v50 = vld [vmem:[#allocation2 + $0x60] sm:$0xff]  ;;  %v552_v51 = vld [vmem:[%s3493_s10 + $0x68] sm:$0xff]  ;;  %808 = vst.msk [vmem:[#allocation2 + $0x20] sm:$0xff] %vm803_vm2, %v743_v39  ;;  %809 = vst.msk [vmem:[#allocation2 + $0x28] sm:$0xff] %vm803_vm2, %v744_v40  ;;  %v747_v52 = vadd.f32 %v683_v30, %v619_v46  ;;  %v748_v53 = vadd.f32 %v684_v32, %v620_v47  ;;  %v749_v54 = vadd.f32 %v685_v38, %v621_v48  ;;  %v623_v59 = vsel %vm3639_vm1, %v551_v45, 0.0 }
  0x7a   : > { %810 = vst.msk [vmem:[#allocation2 + $0x30] sm:$0xff] %vm803_vm2, %v745_v41  ;;  %811 = vst.msk [vmem:[#allocation2 + $0x38] sm:$0xff] %vm803_vm2, %v746_v42  ;;  %v750_v55 = vadd.f32 %v686_v44, %v622_v49  ;;  %v688_v56 = vld [vmem:[#allocation2 + $0x68] sm:$0xff]  ;;  %v553_v57 = vld [vmem:[%s3493_s10 + $0x70] sm:$0xff]  ;;  %v624_v60 = vsel %vm3639_vm1, %v552_v51, 0.0  ;;  %v751_v1 = vadd.f32 %v687_v50, %v623_v59  ;;  %vm1586_vm13 = vcmask (!%p2719_p4), 195712  }
  0x7b   : > { %v689_v58 = vld [vmem:[#allocation2 + $0x70] sm:$0xff]  ;;  %v625_v61 = vsel %vm3639_vm1, %v553_v57, 0.0  ;;  %v554_v62 = vld [vmem:[%s3493_s10 + $0x78] sm:$0xff]  ;;  %v555_v0 = vld [vmem:[%s3493_s10 + $0x80] sm:$0xff]  ;;  %812 = vst.msk [vmem:[#allocation2 + $0x40] sm:$0xff] %vm803_vm2, %v747_v52  ;;  %v752_v3 = vadd.f32 %v688_v56, %v624_v60  ;;  %vm1593_vm14 = vcmask (!%p2719_p4), 261312  }
  0x7c   : > { %v690_v63 = vld [vmem:[#allocation2 + $0x78] sm:$0xff]  ;;  %813 = vst.msk [vmem:[#allocation2 + $0x48] sm:$0xff] %vm803_vm2, %v748_v53  ;;  %814 = vst.msk [vmem:[#allocation2 + $0x50] sm:$0xff] %vm803_vm2, %v749_v54  ;;  %v753_v4 = vadd.f32 %v689_v58, %v625_v61  ;;  %v626_v5 = vsel %vm3639_vm1, %v554_v62, 0.0  ;;  %v691_v6 = vld [vmem:[#allocation2 + $0x80] sm:$0xff]  ;;  %v627_v11 = vsel %vm3639_vm1, %v555_v0, 0.0 }
  0x7d   : > { %815 = vst.msk [vmem:[#allocation2 + $0x58] sm:$0xff] %vm803_vm2, %v750_v55  ;;  %v556_v7 = vld [vmem:[%s3493_s10 + $0x88] sm:$0xff]  ;;  %v754_v10 = vadd.f32 %v690_v63, %v626_v5  ;;  %v557_v13 = vld [vmem:[%s3493_s10 + $0x90] sm:$0xff]  ;;  %v558_v15 = vld [vmem:[%s3493_s10 + $0x98] sm:$0xff]  ;;  %v755_v17 = vadd.f32 %v691_v6, %v627_v11  ;;  %vm1600_vm15 = vcmask (!%p2719_p4), 326912   ;;  %vm1607_vm0 = vcmask (!%p2719_p4), 392512  }
  0x7e   : > { %v692_v9 = vld [vmem:[#allocation2 + $0x88] sm:$0xff]  ;;  %v628_v12 = vsel %vm3639_vm1, %v556_v7, 0.0  ;;  %v693_v14 = vld [vmem:[#allocation2 + $0x90] sm:$0xff]  ;;  %816 = vst.msk [vmem:[#allocation2 + $0x60] sm:$0xff] %vm803_vm2, %v751_v1  ;;  %817 = vst.msk [vmem:[#allocation2 + $0x68] sm:$0xff] %vm803_vm2, %v752_v3  ;;  %v629_v19 = vsel %vm3639_vm1, %v557_v13, 0.0 }
  0x7f   : > { %818 = vst.msk [vmem:[#allocation2 + $0x70] sm:$0xff] %vm803_vm2, %v753_v4  ;;  %v756_v18 = vadd.f32 %v692_v9, %v628_v12  ;;  %v630_v20 = vsel %vm3639_vm1, %v558_v15, 0.0  ;;  %v694_v21 = vld [vmem:[#allocation2 + $0x98] sm:$0xff]  ;;  %v559_v22 = vld [vmem:[%s3493_s10 + $0xa0] sm:$0xff]  ;;  %819 = vst.msk [vmem:[#allocation2 + $0x78] sm:$0xff] %vm803_vm2, %v754_v10  ;;  %v757_v24 = vadd.f32 %v693_v14, %v629_v19 }
  0x80   : > { %v695_v23 = vld [vmem:[#allocation2 + $0xa0] sm:$0xff]  ;;  %v758_v25 = vadd.f32 %v694_v21, %v630_v20  ;;  %v631_v26 = vsel %vm3639_vm1, %v559_v22, 0.0  ;;  %v560_v27 = vld [vmem:[%s3493_s10 + $0xa8] sm:$0xff]  ;;  %v561_v29 = vld [vmem:[%s3493_s10 + $0xb0] sm:$0xff]  ;;  %820 = vst.msk [vmem:[#allocation2 + $0x80] sm:$0xff] %vm803_vm2, %v755_v17 }
  0x81   : > { %v696_v28 = vld [vmem:[#allocation2 + $0xa8] sm:$0xff]  ;;  %821 = vst.msk [vmem:[#allocation2 + $0x88] sm:$0xff] %vm803_vm2, %v756_v18  ;;  %v759_v30 = vadd.f32 %v695_v23, %v631_v26  ;;  %v632_v31 = vsel %vm3639_vm1, %v560_v27, 0.0  ;;  %v633_v32 = vsel %vm3639_vm1, %v561_v29, 0.0  ;;  %v697_v33 = vld [vmem:[#allocation2 + $0xb0] sm:$0xff]  ;;  %v562_v34 = vld [vmem:[%s3493_s10 + $0xb8] sm:$0xff] }
  0x82   : > { %v698_v35 = vld [vmem:[#allocation2 + $0xb8] sm:$0xff]  ;;  %822 = vst.msk [vmem:[#allocation2 + $0x90] sm:$0xff] %vm803_vm2, %v757_v24  ;;  %823 = vst.msk [vmem:[#allocation2 + $0x98] sm:$0xff] %vm803_vm2, %v758_v25  ;;  %v760_v36 = vadd.f32 %v696_v28, %v632_v31  ;;  %v761_v37 = vadd.f32 %v697_v33, %v633_v32  ;;  %v634_v38 = vsel %vm3639_vm1, %v562_v34, 0.0  ;;  %v563_v39 = vld [vmem:[%s3493_s10 + $0xc0] sm:$0xff] }
  0x83   : > { %v699_v40 = vld [vmem:[#allocation2 + $0xc0] sm:$0xff]  ;;  %v564_v41 = vld [vmem:[%s3493_s10 + $0xc8] sm:$0xff]  ;;  %824 = vst.msk [vmem:[#allocation2 + $0xa0] sm:$0xff] %vm803_vm2, %v759_v30  ;;  %v762_v42 = vadd.f32 %v698_v35, %v634_v38  ;;  %v635_v43 = vsel %vm3639_vm1, %v563_v39, 0.0  ;;  %v565_v46 = vld [vmem:[%s3493_s10 + $0xd0] sm:$0xff] }
  0x84   : > { %v636_v44 = vsel %vm3639_vm1, %v564_v41, 0.0  ;;  %v700_v45 = vld [vmem:[#allocation2 + $0xc8] sm:$0xff]  ;;  %v701_v47 = vld [vmem:[#allocation2 + $0xd0] sm:$0xff]  ;;  %825 = vst.msk [vmem:[#allocation2 + $0xa8] sm:$0xff] %vm803_vm2, %v760_v36  ;;  %826 = vst.msk [vmem:[#allocation2 + $0xb0] sm:$0xff] %vm803_vm2, %v761_v37  ;;  %v763_v48 = vadd.f32 %v699_v40, %v635_v43  ;;  %v637_v50 = vsel %vm3639_vm1, %v565_v46, 0.0 }
  0x85   : > { %v764_v49 = vadd.f32 %v700_v45, %v636_v44  ;;  %v566_v51 = vld [vmem:[%s3493_s10 + $0xd8] sm:$0xff]  ;;  %v567_v53 = vld [vmem:[%s3493_s10 + $0xe0] sm:$0xff]  ;;  %827 = vst.msk [vmem:[#allocation2 + $0xb8] sm:$0xff] %vm803_vm2, %v762_v42  ;;  %v765_v54 = vadd.f32 %v701_v47, %v637_v50  ;;  %v568_v58 = vld [vmem:[%s3493_s10 + $0xe8] sm:$0xff] }
  0x86   : > { %v702_v52 = vld [vmem:[#allocation2 + $0xd8] sm:$0xff]  ;;  %v638_v55 = vsel %vm3639_vm1, %v566_v51, 0.0  ;;  %v639_v56 = vsel %vm3639_vm1, %v567_v53, 0.0  ;;  %v703_v57 = vld [vmem:[#allocation2 + $0xe0] sm:$0xff]  ;;  %v704_v59 = vld [vmem:[#allocation2 + $0xe8] sm:$0xff]  ;;  %828 = vst.msk [vmem:[#allocation2 + $0xc0] sm:$0xff] %vm803_vm2, %v763_v48 }
  0x87   : > { %829 = vst.msk [vmem:[#allocation2 + $0xc8] sm:$0xff] %vm803_vm2, %v764_v49  ;;  %v766_v60 = vadd.f32 %v702_v52, %v638_v55  ;;  %v767_v61 = vadd.f32 %v703_v57, %v639_v56  ;;  %v640_v62 = vsel %vm3639_vm1, %v568_v58, 0.0  ;;  %v569_v63 = vld [vmem:[%s3493_s10 + $0xf0] sm:$0xff]  ;;  %v570_v1 = vld [vmem:[%s3493_s10 + $0xf8] sm:$0xff]  ;;  %830 = vst.msk [vmem:[#allocation2 + $0xd0] sm:$0xff] %vm803_vm2, %v765_v54 }
  0x88   : > { %v705_v0 = vld [vmem:[#allocation2 + $0xf0] sm:$0xff]  ;;  %v768_v3 = vadd.f32 %v704_v59, %v640_v62  ;;  %v641_v4 = vsel %vm3639_vm1, %v569_v63, 0.0  ;;  %v642_v5 = vsel %vm3639_vm1, %v570_v1, 0.0  ;;  %v706_v6 = vld [vmem:[#allocation2 + $0xf8] sm:$0xff]  ;;  %v571_v7 = vld [vmem:[%s3493_s10 + $0x100] sm:$0xff] }
  0x89   : > { %v707_v9 = vld [vmem:[#allocation2 + $0x100] sm:$0xff]  ;;  %831 = vst.msk [vmem:[#allocation2 + $0xd8] sm:$0xff] %vm803_vm2, %v766_v60  ;;  %832 = vst.msk [vmem:[#allocation2 + $0xe0] sm:$0xff] %vm803_vm2, %v767_v61  ;;  %v769_v10 = vadd.f32 %v705_v0, %v641_v4  ;;  %v770_v11 = vadd.f32 %v706_v6, %v642_v5  ;;  %v643_v12 = vsel %vm3639_vm1, %v571_v7, 0.0  ;;  %v572_v13 = vld [vmem:[%s3493_s10 + $0x108] sm:$0xff] }
  0x8a   : > { %v708_v14 = vld [vmem:[#allocation2 + $0x108] sm:$0xff]  ;;  %v573_v15 = vld [vmem:[%s3493_s10 + $0x110] sm:$0xff]  ;;  %833 = vst.msk [vmem:[#allocation2 + $0xe8] sm:$0xff] %vm803_vm2, %v768_v3  ;;  %v771_v17 = vadd.f32 %v707_v9, %v643_v12  ;;  %v644_v18 = vsel %vm3639_vm1, %v572_v13, 0.0  ;;  %v574_v21 = vld [vmem:[%s3493_s10 + $0x118] sm:$0xff] }
  0x8b   : > { %v645_v19 = vsel %vm3639_vm1, %v573_v15, 0.0  ;;  %v709_v20 = vld [vmem:[#allocation2 + $0x110] sm:$0xff]  ;;  %v710_v22 = vld [vmem:[#allocation2 + $0x118] sm:$0xff]  ;;  %834 = vst.msk [vmem:[#allocation2 + $0xf0] sm:$0xff] %vm803_vm2, %v769_v10  ;;  %835 = vst.msk [vmem:[#allocation2 + $0xf8] sm:$0xff] %vm803_vm2, %v770_v11  ;;  %v772_v23 = vadd.f32 %v708_v14, %v644_v18  ;;  %v646_v25 = vsel %vm3639_vm1, %v574_v21, 0.0 }
  0x8c   : > { %v773_v24 = vadd.f32 %v709_v20, %v645_v19  ;;  %v575_v26 = vld [vmem:[%s3493_s10 + $0x120] sm:$0xff]  ;;  %v576_v28 = vld [vmem:[%s3493_s10 + $0x128] sm:$0xff]  ;;  %836 = vst.msk [vmem:[#allocation2 + $0x100] sm:$0xff] %vm803_vm2, %v771_v17  ;;  %v774_v29 = vadd.f32 %v710_v22, %v646_v25  ;;  %v577_v33 = vld [vmem:[%s3493_s10 + $0x130] sm:$0xff] }
  0x8d   : > { %v711_v27 = vld [vmem:[#allocation2 + $0x120] sm:$0xff]  ;;  %v647_v30 = vsel %vm3639_vm1, %v575_v26, 0.0  ;;  %v648_v31 = vsel %vm3639_vm1, %v576_v28, 0.0  ;;  %v712_v32 = vld [vmem:[#allocation2 + $0x128] sm:$0xff]  ;;  %v713_v34 = vld [vmem:[#allocation2 + $0x130] sm:$0xff]  ;;  %837 = vst.msk [vmem:[#allocation2 + $0x108] sm:$0xff] %vm803_vm2, %v772_v23 }
  0x8e   : > { %838 = vst.msk [vmem:[#allocation2 + $0x110] sm:$0xff] %vm803_vm2, %v773_v24  ;;  %v775_v35 = vadd.f32 %v711_v27, %v647_v30  ;;  %v776_v36 = vadd.f32 %v712_v32, %v648_v31  ;;  %v649_v37 = vsel %vm3639_vm1, %v577_v33, 0.0  ;;  %v578_v38 = vld [vmem:[%s3493_s10 + $0x138] sm:$0xff]  ;;  %v579_v40 = vld [vmem:[%s3493_s10 + $0x140] sm:$0xff]  ;;  %839 = vst.msk [vmem:[#allocation2 + $0x118] sm:$0xff] %vm803_vm2, %v774_v29 }
  0x8f   : > { %v714_v39 = vld [vmem:[#allocation2 + $0x138] sm:$0xff]  ;;  %v777_v41 = vadd.f32 %v713_v34, %v649_v37  ;;  %v650_v42 = vsel %vm3639_vm1, %v578_v38, 0.0  ;;  %v651_v43 = vsel %vm3639_vm1, %v579_v40, 0.0  ;;  %v715_v44 = vld [vmem:[#allocation2 + $0x140] sm:$0xff]  ;;  %v580_v45 = vld [vmem:[%s3493_s10 + $0x148] sm:$0xff] }
  0x90   : > { %v716_v46 = vld [vmem:[#allocation2 + $0x148] sm:$0xff]  ;;  %840 = vst.msk [vmem:[#allocation2 + $0x120] sm:$0xff] %vm803_vm2, %v775_v35  ;;  %841 = vst.msk [vmem:[#allocation2 + $0x128] sm:$0xff] %vm803_vm2, %v776_v36  ;;  %v778_v47 = vadd.f32 %v714_v39, %v650_v42  ;;  %v779_v48 = vadd.f32 %v715_v44, %v651_v43  ;;  %v652_v49 = vsel %vm3639_vm1, %v580_v45, 0.0  ;;  %v581_v50 = vld [vmem:[%s3493_s10 + $0x150] sm:$0xff] }
  0x91   : > { %v717_v51 = vld [vmem:[#allocation2 + $0x150] sm:$0xff]  ;;  %v582_v52 = vld [vmem:[%s3493_s10 + $0x158] sm:$0xff]  ;;  %842 = vst.msk [vmem:[#allocation2 + $0x130] sm:$0xff] %vm803_vm2, %v777_v41  ;;  %v780_v53 = vadd.f32 %v716_v46, %v652_v49  ;;  %v653_v54 = vsel %vm3639_vm1, %v581_v50, 0.0  ;;  %v583_v57 = vld [vmem:[%s3493_s10 + $0x160] sm:$0xff] }
  0x92   : > { %v654_v55 = vsel %vm3639_vm1, %v582_v52, 0.0  ;;  %v718_v56 = vld [vmem:[#allocation2 + $0x158] sm:$0xff]  ;;  %v719_v58 = vld [vmem:[#allocation2 + $0x160] sm:$0xff]  ;;  %843 = vst.msk [vmem:[#allocation2 + $0x138] sm:$0xff] %vm803_vm2, %v778_v47  ;;  %844 = vst.msk [vmem:[#allocation2 + $0x140] sm:$0xff] %vm803_vm2, %v779_v48  ;;  %v781_v59 = vadd.f32 %v717_v51, %v653_v54  ;;  %v655_v61 = vsel %vm3639_vm1, %v583_v57, 0.0 }
  0x93   : > { %v782_v60 = vadd.f32 %v718_v56, %v654_v55  ;;  %v584_v62 = vld [vmem:[%s3493_s10 + $0x168] sm:$0xff]  ;;  %v585_v0 = vld [vmem:[%s3493_s10 + $0x170] sm:$0xff]  ;;  %845 = vst.msk [vmem:[#allocation2 + $0x148] sm:$0xff] %vm803_vm2, %v780_v53  ;;  %v783_v1 = vadd.f32 %v719_v58, %v655_v61  ;;  %v586_v6 = vld [vmem:[%s3493_s10 + $0x178] sm:$0xff] }
  0x94   : > { %v720_v63 = vld [vmem:[#allocation2 + $0x168] sm:$0xff]  ;;  %v656_v3 = vsel %vm3639_vm1, %v584_v62, 0.0  ;;  %v657_v4 = vsel %vm3639_vm1, %v585_v0, 0.0  ;;  %v721_v5 = vld [vmem:[#allocation2 + $0x170] sm:$0xff]  ;;  %v722_v7 = vld [vmem:[#allocation2 + $0x178] sm:$0xff]  ;;  %846 = vst.msk [vmem:[#allocation2 + $0x150] sm:$0xff] %vm803_vm2, %v781_v59 }
  0x95   : > { %847 = vst.msk [vmem:[#allocation2 + $0x158] sm:$0xff] %vm803_vm2, %v782_v60  ;;  %v784_v9 = vadd.f32 %v720_v63, %v656_v3  ;;  %v785_v10 = vadd.f32 %v721_v5, %v657_v4  ;;  %v658_v11 = vsel %vm3639_vm1, %v586_v6, 0.0  ;;  %v587_v12 = vld [vmem:[%s3493_s10 + $0x180] sm:$0xff]  ;;  %v588_v14 = vld [vmem:[%s3493_s10 + $0x188] sm:$0xff]  ;;  %848 = vst.msk [vmem:[#allocation2 + $0x160] sm:$0xff] %vm803_vm2, %v783_v1 }
  0x96   : > { %v723_v13 = vld [vmem:[#allocation2 + $0x180] sm:$0xff]  ;;  %v786_v15 = vadd.f32 %v722_v7, %v658_v11  ;;  %v659_v17 = vsel %vm3639_vm1, %v587_v12, 0.0  ;;  %v660_v18 = vsel %vm3639_vm1, %v588_v14, 0.0  ;;  %v724_v19 = vld [vmem:[#allocation2 + $0x188] sm:$0xff]  ;;  %v589_v20 = vld [vmem:[%s3493_s10 + $0x190] sm:$0xff] }
  0x97   : > { %v725_v21 = vld [vmem:[#allocation2 + $0x190] sm:$0xff]  ;;  %849 = vst.msk [vmem:[#allocation2 + $0x168] sm:$0xff] %vm803_vm2, %v784_v9  ;;  %850 = vst.msk [vmem:[#allocation2 + $0x170] sm:$0xff] %vm803_vm2, %v785_v10  ;;  %v787_v22 = vadd.f32 %v723_v13, %v659_v17  ;;  %v788_v23 = vadd.f32 %v724_v19, %v660_v18  ;;  %v661_v24 = vsel %vm3639_vm1, %v589_v20, 0.0  ;;  %v590_v25 = vld [vmem:[%s3493_s10 + $0x198] sm:$0xff] }
  0x98   : > { %v726_v26 = vld [vmem:[#allocation2 + $0x198] sm:$0xff]  ;;  %v591_v27 = vld [vmem:[%s3493_s10 + $0x1a0] sm:$0xff]  ;;  %851 = vst.msk [vmem:[#allocation2 + $0x178] sm:$0xff] %vm803_vm2, %v786_v15  ;;  %v789_v28 = vadd.f32 %v725_v21, %v661_v24  ;;  %v662_v29 = vsel %vm3639_vm1, %v590_v25, 0.0  ;;  %v592_v32 = vld [vmem:[%s3493_s10 + $0x1a8] sm:$0xff] }
  0x99   : > { %v663_v30 = vsel %vm3639_vm1, %v591_v27, 0.0  ;;  %v727_v31 = vld [vmem:[#allocation2 + $0x1a0] sm:$0xff]  ;;  %v728_v33 = vld [vmem:[#allocation2 + $0x1a8] sm:$0xff]  ;;  %852 = vst.msk [vmem:[#allocation2 + $0x180] sm:$0xff] %vm803_vm2, %v787_v22  ;;  %853 = vst.msk [vmem:[#allocation2 + $0x188] sm:$0xff] %vm803_vm2, %v788_v23  ;;  %v790_v34 = vadd.f32 %v726_v26, %v662_v29  ;;  %v664_v36 = vsel %vm3639_vm1, %v592_v32, 0.0 }
  0x9a   : > { %v791_v35 = vadd.f32 %v727_v31, %v663_v30  ;;  %v593_v37 = vld [vmem:[%s3493_s10 + $0x1b0] sm:$0xff]  ;;  %v594_v39 = vld [vmem:[%s3493_s10 + $0x1b8] sm:$0xff]  ;;  %854 = vst.msk [vmem:[#allocation2 + $0x190] sm:$0xff] %vm803_vm2, %v789_v28  ;;  %v792_v40 = vadd.f32 %v728_v33, %v664_v36  ;;  %v595_v44 = vld [vmem:[%s3493_s10 + $0x1c0] sm:$0xff] }
  0x9b   : > { %v729_v38 = vld [vmem:[#allocation2 + $0x1b0] sm:$0xff]  ;;  %v665_v41 = vsel %vm3639_vm1, %v593_v37, 0.0  ;;  %v666_v42 = vsel %vm3639_vm1, %v594_v39, 0.0  ;;  %v730_v43 = vld [vmem:[#allocation2 + $0x1b8] sm:$0xff]  ;;  %v731_v45 = vld [vmem:[#allocation2 + $0x1c0] sm:$0xff]  ;;  %855 = vst.msk [vmem:[#allocation2 + $0x198] sm:$0xff] %vm803_vm2, %v790_v34 }
  0x9c   : > { %856 = vst.msk [vmem:[#allocation2 + $0x1a0] sm:$0xff] %vm803_vm2, %v791_v35  ;;  %v793_v46 = vadd.f32 %v729_v38, %v665_v41  ;;  %v794_v47 = vadd.f32 %v730_v43, %v666_v42  ;;  %v667_v48 = vsel %vm3639_vm1, %v595_v44, 0.0  ;;  %v596_v49 = vld [vmem:[%s3493_s10 + $0x1c8] sm:$0xff]  ;;  %v597_v51 = vld [vmem:[%s3493_s10 + $0x1d0] sm:$0xff]  ;;  %857 = vst.msk [vmem:[#allocation2 + $0x1a8] sm:$0xff] %vm803_vm2, %v792_v40 }
  0x9d   : > { %v732_v50 = vld [vmem:[#allocation2 + $0x1c8] sm:$0xff]  ;;  %v795_v52 = vadd.f32 %v731_v45, %v667_v48  ;;  %v668_v53 = vsel %vm3639_vm1, %v596_v49, 0.0  ;;  %v669_v54 = vsel %vm3639_vm1, %v597_v51, 0.0  ;;  %v733_v55 = vld [vmem:[#allocation2 + $0x1d0] sm:$0xff]  ;;  %v598_v56 = vld [vmem:[%s3493_s10 + $0x1d8] sm:$0xff] }
  0x9e   : > { %v734_v57 = vld [vmem:[#allocation2 + $0x1d8] sm:$0xff]  ;;  %858 = vst.msk [vmem:[#allocation2 + $0x1b0] sm:$0xff] %vm803_vm2, %v793_v46  ;;  %859 = vst.msk [vmem:[#allocation2 + $0x1b8] sm:$0xff] %vm803_vm2, %v794_v47  ;;  %v796_v58 = vadd.f32 %v732_v50, %v668_v53  ;;  %v797_v59 = vadd.f32 %v733_v55, %v669_v54  ;;  %v670_v60 = vsel %vm3639_vm1, %v598_v56, 0.0  ;;  %v599_v61 = vld [vmem:[%s3493_s10 + $0x1e0] sm:$0xff] }
  0x9f   : > { %v735_v62 = vld [vmem:[#allocation2 + $0x1e0] sm:$0xff]  ;;  %v600_v63 = vld [vmem:[%s3493_s10 + $0x1e8] sm:$0xff]  ;;  %860 = vst.msk [vmem:[#allocation2 + $0x1c0] sm:$0xff] %vm803_vm2, %v795_v52  ;;  %v798_v0 = vadd.f32 %v734_v57, %v670_v60  ;;  %v671_v1 = vsel %vm3639_vm1, %v599_v61, 0.0  ;;  %v601_v5 = vld [vmem:[%s3493_s10 + $0x1f0] sm:$0xff]  ;;  %871 = sbr.rel (%p2719_p4) target bundleno = 1141 (0x475), region = 78 }
  0xa0   : > { %v672_v3 = vsel %vm3639_vm1, %v600_v63, 0.0  ;;  %v736_v4 = vld [vmem:[#allocation2 + $0x1e8] sm:$0xff]  ;;  %v737_v6 = vld [vmem:[#allocation2 + $0x1f0] sm:$0xff]  ;;  %861 = vst.msk [vmem:[#allocation2 + $0x1c8] sm:$0xff] %vm803_vm2, %v796_v58  ;;  %862 = vst.msk [vmem:[#allocation2 + $0x1d0] sm:$0xff] %vm803_vm2, %v797_v59  ;;  %v799_v7 = vadd.f32 %v735_v62, %v671_v1  ;;  %v673_v10 = vsel %vm3639_vm1, %v601_v5, 0.0 }
  0xa1   : > { %v800_v9 = vadd.f32 %v736_v4, %v672_v3  ;;  %v602_v11 = vld [vmem:[%s3493_s10 + $0x1f8] sm:$0xff]  ;;  %863 = vst.msk [vmem:[#allocation2 + $0x1d8] sm:$0xff] %vm803_vm2, %v798_v0  ;;  %v801_v13 = vadd.f32 %v737_v6, %v673_v10  ;;  %v880_v17 = vld [vmem:[#allocation2 + $0x40] sm:$0xff] (!%p2719_p4)  ;;  %v881_v19 = vld [vmem:[#allocation2 + $0x48] sm:$0xff] (!%p2719_p4) }
  0xa2   : > { %v738_v12 = vld [vmem:[#allocation2 + $0x1f8] sm:$0xff]  ;;  %v674_v14 = vsel %vm3639_vm1, %v602_v11, 0.0  ;;  %864 = vst.msk [vmem:[#allocation2 + $0x1e0] sm:$0xff] %vm803_vm2, %v799_v7  ;;  %v872_v18 = vld [vmem:[#allocation2] sm:$0xff] (!%p2719_p4)  ;;  %v960_v20 = vsel (!%p2719_p4), %vm803_vm2, %v880_v17, 0.0  ;;  %v873_v21 = vld [vmem:[#allocation2 + $0x8] sm:$0xff] (!%p2719_p4) }
  0xa3   : > { %865 = vst.msk [vmem:[#allocation2 + $0x1e8] sm:$0xff] %vm803_vm2, %v800_v9  ;;  %v802_v15 = vadd.f32 %v738_v12, %v674_v14  ;;  %866 = vst.msk [vmem:[#allocation2 + $0x1f0] sm:$0xff] %vm803_vm2, %v801_v13  ;;  %v936_v16 = vsel (!%p2719_p4), %vm803_vm2, %v872_v18, 0.0  ;;  %961 = vadd.xlane.f32.xlu1 (!%p2719_p4), %v960_v20  ;;  %v963_v22 = vsel (!%p2719_p4), %vm803_vm2, %v881_v19, 0.0  ;;  %v939_v23 = vsel (!%p2719_p4), %vm803_vm2, %v873_v21, 0.0  ;;  %v882_v24 = vld [vmem:[#allocation2 + $0x50] sm:$0xff] (!%p2719_p4) }
  0xa4   : > { %937 = vadd.xlane.f32.xlu0 (!%p2719_p4), %v936_v16  ;;  %v874_v25 = vld [vmem:[#allocation2 + $0x10] sm:$0xff] (!%p2719_p4)  ;;  %v966_v26 = vsel (!%p2719_p4), %vm803_vm2, %v882_v24, 0.0  ;;  %v889_v28 = vld [vmem:[#allocation2 + $0x88] sm:$0xff] (!%p2719_p4)  ;;  %v888_v29 = vld [vmem:[#allocation2 + $0x80] sm:$0xff] (!%p2719_p4)  ;;  %vm1614_vm1 = vcmask (!%p2719_p4), 458112  }
  0xa5   : > { %867 = vst.msk [vmem:[#allocation2 + $0x1f8] sm:$0xff] %vm803_vm2, %v802_v15  ;;  %v942_v27 = vsel (!%p2719_p4), %vm803_vm2, %v874_v25, 0.0  ;;  %v987_v30 = vsel (!%p2719_p4), %vm803_vm2, %v889_v28, 0.0  ;;  %v984_v31 = vsel (!%p2719_p4), %vm803_vm2, %v888_v29, 0.0  ;;  %v883_v32 = vld [vmem:[#allocation2 + $0x58] sm:$0xff] (!%p2719_p4)  ;;  %v896_v36 = vld [vmem:[#allocation2 + $0xc0] sm:$0xff] (!%p2719_p4) }
  0xa6   : > { %v875_v33 = vld [vmem:[#allocation2 + $0x18] sm:$0xff]  ;;  %v969_v34 = vsel %vm803_vm2, %v883_v32, 0.0  ;;  %v890_v37 = vld [vmem:[#allocation2 + $0x90] sm:$0xff]  ;;  %v1008_v38 = vsel %vm803_vm2, %v896_v36, 0.0  ;;  %v876_v40 = vld [vmem:[#allocation2 + $0x20] sm:$0xff] }
  0xa7   : > { %964 = vadd.xlane.f32.xlu1 %v963_v22  ;;  %v945_v35 = vsel %vm803_vm2, %v875_v33, 0.0  ;;  %v990_v39 = vsel %vm803_vm2, %v890_v37, 0.0  ;;  %v897_v41 = vld [vmem:[#allocation2 + $0xc8] sm:$0xff]  ;;  %v948_v42 = vsel %vm803_vm2, %v876_v40, 0.0  ;;  %v891_v44 = vld [vmem:[#allocation2 + $0x98] sm:$0xff]  ;;  %v884_v45 = vld [vmem:[#allocation2 + $0x60] sm:$0xff] }
  0xa8   : > { %940 = vadd.xlane.f32.xlu0 %v939_v23  ;;  %v1011_v43 = vsel %vm803_vm2, %v897_v41, 0.0  ;;  %v993_v46 = vsel %vm803_vm2, %v891_v44, 0.0  ;;  %v972_v47 = vsel %vm803_vm2, %v884_v45, 0.0  ;;  %v904_v48 = vld [vmem:[#allocation2 + $0x100] sm:$0xff]  ;;  %v898_v49 = vld [vmem:[#allocation2 + $0xd0] sm:$0xff]  ;;  %v877_v52 = vld [vmem:[#allocation2 + $0x28] sm:$0xff] }
  0xa9   : > { %v1032_v50 = vsel %vm803_vm2, %v904_v48, 0.0  ;;  %v1014_v51 = vsel %vm803_vm2, %v898_v49, 0.0  ;;  %v905_v53 = vld [vmem:[#allocation2 + $0x108] sm:$0xff]  ;;  %v951_v54 = vsel %vm803_vm2, %v877_v52, 0.0  ;;  %v892_v56 = vld [vmem:[#allocation2 + $0xa0] sm:$0xff]  ;;  %v906_v60 = vld [vmem:[#allocation2 + $0x110] sm:$0xff] }
  0xaa   : > { %v1035_v55 = vsel %vm803_vm2, %v905_v53, 0.0  ;;  %v885_v57 = vld [vmem:[#allocation2 + $0x68] sm:$0xff]  ;;  %v996_v58 = vsel %vm803_vm2, %v892_v56, 0.0  ;;  %v899_v61 = vld [vmem:[#allocation2 + $0xd8] sm:$0xff]  ;;  %v1038_v62 = vsel %vm803_vm2, %v906_v60, 0.0  ;;  %v912_v1 = vld [vmem:[#allocation2 + $0x140] sm:$0xff] }
  0xab   : > { %967 = vadd.xlane.f32.xlu1 %v966_v26  ;;  %v975_v59 = vsel %vm803_vm2, %v885_v57, 0.0  ;;  %v1017_v63 = vsel %vm803_vm2, %v899_v61, 0.0  ;;  %v913_v0 = vld [vmem:[#allocation2 + $0x148] sm:$0xff]  ;;  %v1056_v4 = vsel %vm803_vm2, %v912_v1, 0.0  ;;  %v886_v5 = vld [vmem:[#allocation2 + $0x70] sm:$0xff]  ;;  %v900_v10 = vld [vmem:[#allocation2 + $0xe0] sm:$0xff] }
  0xac   : > { %943 = vadd.xlane.f32.xlu0 %v942_v27  ;;  %v1059_v3 = vsel %vm803_vm2, %v913_v0, 0.0  ;;  %v878_v6 = vld [vmem:[#allocation2 + $0x30] sm:$0xff]  ;;  %v978_v7 = vsel %vm803_vm2, %v886_v5, 0.0  ;;  %v893_v11 = vld [vmem:[#allocation2 + $0xa8] sm:$0xff]  ;;  %v1020_v12 = vsel %vm803_vm2, %v900_v10, 0.0  ;;  %v907_v15 = vld [vmem:[#allocation2 + $0x118] sm:$0xff] }
  0xad   : > { %v954_v9 = vsel %vm803_vm2, %v878_v6, 0.0  ;;  %v999_v13 = vsel %vm803_vm2, %v893_v11, 0.0  ;;  %v914_v14 = vld [vmem:[#allocation2 + $0x150] sm:$0xff]  ;;  %v1041_v18 = vsel %vm803_vm2, %v907_v15, 0.0  ;;  %v921_v19 = vld [vmem:[#allocation2 + $0x188] sm:$0xff]  ;;  %v920_v20 = vld [vmem:[#allocation2 + $0x180] sm:$0xff] }
  0xae   : > { %v1062_v17 = vsel %vm803_vm2, %v914_v14, 0.0  ;;  %v1083_v16 = vsel %vm803_vm2, %v921_v19, 0.0  ;;  %v1080_v21 = vsel %vm803_vm2, %v920_v20, 0.0  ;;  %v887_v22 = vld [vmem:[#allocation2 + $0x78] sm:$0xff]  ;;  %v901_v26 = vld [vmem:[#allocation2 + $0xe8] sm:$0xff]  ;;  %v894_v27 = vld [vmem:[#allocation2 + $0xb0] sm:$0xff] }
  0xaf   : > { %988 = vadd.xlane.f32.xlu1 %v987_v30  ;;  %v879_v23 = vld [vmem:[#allocation2 + $0x38] sm:$0xff]  ;;  %v981_v24 = vsel %vm803_vm2, %v887_v22, 0.0  ;;  %v1023_v28 = vsel %vm803_vm2, %v901_v26, 0.0  ;;  %v1002_v29 = vsel %vm803_vm2, %v894_v27, 0.0 }
  0xb0   : > { %985 = vadd.xlane.f32.xlu0 %v984_v31  ;;  %v957_v25 = vsel %vm803_vm2, %v879_v23, 0.0  ;;  %v915_v30 = vld [vmem:[#allocation2 + $0x158] sm:$0xff]  ;;  %v908_v31 = vld [vmem:[#allocation2 + $0x120] sm:$0xff] }
  0xb1   : > { %v1065_v32 = vsel %vm803_vm2, %v915_v30, 0.0  ;;  %v1044_v33 = vsel %vm803_vm2, %v908_v31, 0.0 }
  0xb3   : > { %970 = vadd.xlane.f32.xlu1 %v969_v34  ;;  %v928_v34 = vld [vmem:[#allocation2 + $0x1c0] sm:$0xff] }
  0xb4   : > { %946 = vadd.xlane.f32.xlu0 %v945_v35  ;;  %v922_v35 = vld [vmem:[#allocation2 + $0x190] sm:$0xff]  ;;  %v1104_v36 = vsel %vm803_vm2, %v928_v34, 0.0 }
  0xb5   : > { %v1086_v37 = vsel %vm803_vm2, %v922_v35, 0.0 }
  0xb7   : > { %1009 = vadd.xlane.f32.xlu1 %v1008_v38  ;;  %v895_v38 = vld [vmem:[#allocation2 + $0xb8] sm:$0xff] }
  0xb8   : > { %991 = vadd.xlane.f32.xlu0 %v990_v39  ;;  %v929_v39 = vld [vmem:[#allocation2 + $0x1c8] sm:$0xff]  ;;  %v1005_v40 = vsel %vm803_vm2, %v895_v38, 0.0 }
  0xb9   : > { %v1107_v41 = vsel %vm803_vm2, %v929_v39, 0.0 }
  0xbb   : > { %949 = vadd.xlane.f32.xlu1 %v948_v42  ;;  %v909_v42 = vld [vmem:[#allocation2 + $0x128] sm:$0xff] }
  0xbc   : > { %1012 = vadd.xlane.f32.xlu0 %v1011_v43  ;;  %v902_v43 = vld [vmem:[#allocation2 + $0xf0] sm:$0xff]  ;;  %v1047_v44 = vsel %vm803_vm2, %v909_v42, 0.0 }
  0xbd   : > { %v1026_v45 = vsel %vm803_vm2, %v902_v43, 0.0 }
  0xbf   : > { %994 = vadd.xlane.f32.xlu1 %v993_v46  ;;  %v923_v46 = vld [vmem:[#allocation2 + $0x198] sm:$0xff] }
  0xc0   : > { %973 = vadd.xlane.f32.xlu0 %v972_v47  ;;  %v916_v47 = vld [vmem:[#allocation2 + $0x160] sm:$0xff]  ;;  %v1089_v48 = vsel %vm803_vm2, %v923_v46, 0.0 }
  0xc1   : > { %v1068_v49 = vsel %vm803_vm2, %v916_v47, 0.0 }
  0xc3   : > { %1033 = vadd.xlane.f32.xlu1 %v1032_v50  ;;  %v903_v50 = vld [vmem:[#allocation2 + $0xf8] sm:$0xff] }
  0xc4   : > { %1015 = vadd.xlane.f32.xlu0 %v1014_v51  ;;  %v930_v51 = vld [vmem:[#allocation2 + $0x1d0] sm:$0xff]  ;;  %v1029_v52 = vsel %vm803_vm2, %v903_v50, 0.0 }
  0xc5   : > { %v1110_v53 = vsel %vm803_vm2, %v930_v51, 0.0 }
  0xc7   : > { %952 = vadd.xlane.f32.xlu1 %v951_v54  ;;  %v917_v54 = vld [vmem:[#allocation2 + $0x168] sm:$0xff] }
  0xc8   : > { %1036 = vadd.xlane.f32.xlu0 %v1035_v55  ;;  %v910_v55 = vld [vmem:[#allocation2 + $0x130] sm:$0xff]  ;;  %v1071_v56 = vsel %vm803_vm2, %v917_v54, 0.0 }
  0xc9   : > { %v1050_v57 = vsel %vm803_vm2, %v910_v55, 0.0 }
  0xcb   : > { %997 = vadd.xlane.f32.xlu1 %v996_v58  ;;  %v931_v58 = vld [vmem:[#allocation2 + $0x1d8] sm:$0xff] }
  0xcc   : > { %976 = vadd.xlane.f32.xlu0 %v975_v59  ;;  %v924_v59 = vld [vmem:[#allocation2 + $0x1a0] sm:$0xff]  ;;  %v1113_v60 = vsel %vm803_vm2, %v931_v58, 0.0 }
  0xcd   : > { %v1092_v61 = vsel %vm803_vm2, %v924_v59, 0.0 }
  0xcf   : > { %1039 = vadd.xlane.f32.xlu1 %v1038_v62  ;;  %v918_v62 = vld [vmem:[#allocation2 + $0x170] sm:$0xff] }
  0xd0   : > { %1018 = vadd.xlane.f32.xlu0 %v1017_v63  ;;  %v911_v63 = vld [vmem:[#allocation2 + $0x138] sm:$0xff]  ;;  %v1074_v0 = vsel %vm803_vm2, %v918_v62, 0.0 }
  0xd1   : > { %v1053_v1 = vsel %vm803_vm2, %v911_v63, 0.0 }
  0xd3   : > { %1060 = vadd.xlane.f32.xlu1 %v1059_v3  ;;  %v932_v3 = vld [vmem:[#allocation2 + $0x1e0] sm:$0xff] }
  0xd4   : > { %1057 = vadd.xlane.f32.xlu0 %v1056_v4  ;;  %v925_v4 = vld [vmem:[#allocation2 + $0x1a8] sm:$0xff]  ;;  %v1116_v5 = vsel %vm803_vm2, %v932_v3, 0.0 }
  0xd5   : > { %v1095_v6 = vsel %vm803_vm2, %v925_v4, 0.0 }
  0xd7   : > { %979 = vadd.xlane.f32.xlu1 %v978_v7  ;;  %v926_v7 = vld [vmem:[#allocation2 + $0x1b0] sm:$0xff] }
  0xd8   : > { %955 = vadd.xlane.f32.xlu0 %v954_v9  ;;  %v919_v9 = vld [vmem:[#allocation2 + $0x178] sm:$0xff]  ;;  %v1098_v10 = vsel %vm803_vm2, %v926_v7, 0.0 }
  0xd9   : > { %v1077_v11 = vsel %vm803_vm2, %v919_v9, 0.0 }
  0xdb   : > { %1021 = vadd.xlane.f32.xlu1 %v1020_v12  ;;  %v927_v12 = vld [vmem:[#allocation2 + $0x1b8] sm:$0xff] }
  0xdc   : > { %1000 = vadd.xlane.f32.xlu0 %v999_v13  ;;  %v933_v13 = vld [vmem:[#allocation2 + $0x1e8] sm:$0xff]  ;;  %v1101_v14 = vsel %vm803_vm2, %v927_v12, 0.0 }
  0xdd   : > { %v1119_v15 = vsel %vm803_vm2, %v933_v13, 0.0 }
  0xdf   : > { %1063 = vadd.xlane.f32.xlu1 %v1062_v17  ;;  %v934_v17 = vld [vmem:[#allocation2 + $0x1f0] sm:$0xff] }
  0xe0   : > { %1042 = vadd.xlane.f32.xlu0 %v1041_v18  ;;  %v935_v18 = vld [vmem:[#allocation2 + $0x1f8] sm:$0xff]  ;;  %v1122_v19 = vsel %vm803_vm2, %v934_v17, 0.0 }
  0xe1   : > { %v1125_v20 = vsel %vm803_vm2, %v935_v18, 0.0  ;;  %vm1621_vm2 = vcmask 523712  }
  0xe3   : > { %1084 = vadd.xlane.f32.xlu1 %v1083_v16 }
  0xe4   : > { %1081 = vadd.xlane.f32.xlu0 %v1080_v21 }
  0xe7   : > { %982 = vadd.xlane.f32.xlu1 %v981_v24  ;;  %v3959_v24 = vand.u32 127, %v603_v2 }
  0xe8   : > { %958 = vadd.xlane.f32.xlu0 %v957_v25 }
  0xe9   : > { %v3963_v27 = vsub.s32 %v3959_v24, %v3633_v8 }
  0xeb   : > { %1024 = vadd.xlane.f32.xlu1 %v1023_v28 }
  0xec   : > { %1003 = vadd.xlane.f32.xlu0 %v1002_v29 }
  0xef   : > { %1066 = vadd.xlane.f32.xlu1 %v1065_v32 }
  0xf0   : > { %1045 = vadd.xlane.f32.xlu0 %v1044_v33 }
  0xf3   : > { %1105 = vadd.xlane.f32.xlu1 %v1104_v36 }
  0xf4   : > { %1087 = vadd.xlane.f32.xlu0 %v1086_v37 }
  0xf7   : > { %1006 = vadd.xlane.f32.xlu1 %v1005_v40 }
  0xf8   : > { %1108 = vadd.xlane.f32.xlu0 %v1107_v41 }
  0xfb   : > { %1048 = vadd.xlane.f32.xlu1 %v1047_v44 }
  0xfc   : > { %1027 = vadd.xlane.f32.xlu0 %v1026_v45 }
  0xff   : > { %1090 = vadd.xlane.f32.xlu1 %v1089_v48 }
 0x100   : > { %1069 = vadd.xlane.f32.xlu0 %v1068_v49 }
 0x103   : > { %1030 = vadd.xlane.f32.xlu1 %v1029_v52 }
 0x104   : > { %1111 = vadd.xlane.f32.xlu0 %v1110_v53 }
 0x107   : > { %1072 = vadd.xlane.f32.xlu1 %v1071_v56 }
 0x108   : > { %1051 = vadd.xlane.f32.xlu0 %v1050_v57 }
 0x10b   : > { %1114 = vadd.xlane.f32.xlu1 %v1113_v60 }
 0x10c   : > { %1093 = vadd.xlane.f32.xlu0 %v1092_v61 }
 0x10f   : > { %1075 = vadd.xlane.f32.xlu1 %v1074_v0 }
 0x110   : > { %1054 = vadd.xlane.f32.xlu0 %v1053_v1 }
 0x113   : > { %1117 = vadd.xlane.f32.xlu1 %v1116_v5 }
 0x114   : > { %1096 = vadd.xlane.f32.xlu0 %v1095_v6 }
 0x117   : > { %1099 = vadd.xlane.f32.xlu1 %v1098_v10 }
 0x118   : > { %1078 = vadd.xlane.f32.xlu0 %v1077_v11 }
 0x11b   : > { %1102 = vadd.xlane.f32.xlu1 %v1101_v14 }
 0x11c   : > { %1120 = vadd.xlane.f32.xlu0 %v1119_v15 }
 0x11f   : > { %1126 = vadd.xlane.f32.xlu1 %v1125_v20 }
 0x120   : > { %1123 = vadd.xlane.f32.xlu0 %v1122_v19 }
 0x130   : > { %v962_v16 = vpop.xlane.xlu1 %961 }
 0x131   : > { %v938_v21 = vpop.xlane.xlu0 %937  ;;  %v1229_v3 = vrot.slane %v962_v16, %v3963_v27 }
 0x132   : > { %v1197_v4 = vrot.slane %v938_v21, %v3963_v27 }
 0x134   : > { %v965_v22 = vpop.xlane.xlu1 %964 }
 0x135   : > { %v941_v23 = vpop.xlane.xlu0 %940  ;;  %v1233_v62 = vrot.slane %v965_v22, %v3963_v27 }
 0x136   : > { %v1201_v63 = vrot.slane %v941_v23, %v3963_v27 }
 0x137   : > { %v1464_v12 = vsel %vm1450_vm3, %v1233_v62, %v1229_v3 }
 0x138   : > { %v968_v25 = vpop.xlane.xlu1 %967  ;;  %v1451_v13 = vsel %vm1450_vm3, %v1201_v63, %v1197_v4 }
 0x139   : > { %v944_v26 = vpop.xlane.xlu0 %943  ;;  %v1237_v0 = vrot.slane %v968_v25, %v3963_v27 }
 0x13a   : > { %v1205_v1 = vrot.slane %v944_v26, %v3963_v27 }
 0x13b   : > { %v1465_v17 = vsel %vm1452_vm4, %v1237_v0, %v1464_v12 }
 0x13c   : > { %v989_v28 = vpop.xlane.xlu1 %988  ;;  %v1453_v18 = vsel %vm1452_vm4, %v1205_v1, %v1451_v13 }
 0x13d   : > { %v986_v29 = vpop.xlane.xlu0 %985  ;;  %v1265_v30 = vrot.slane %v989_v28, %v3963_v27 }
 0x13e   : > { %v1261_v31 = vrot.slane %v986_v29, %v3963_v27 }
 0x140   : > { %v3968_v32 = vsel %vm1450_vm3, %v1265_v30, %v1261_v31  ;;  %v971_v33 = vpop.xlane.xlu1 %970 }
 0x141   : > { %v947_v34 = vpop.xlane.xlu0 %946  ;;  %v1241_v5 = vrot.slane %v971_v33, %v3963_v27 }
 0x142   : > { %v1209_v6 = vrot.slane %v947_v34, %v3963_v27 }
 0x143   : > { %v1466_v16 = vsel %vm1454_vm5, %v1241_v5, %v1465_v17 }
 0x144   : > { %v1010_v2 = vpop.xlane.xlu1 %1009  ;;  %v1455_v21 = vsel %vm1454_vm5, %v1209_v6, %v1453_v18 }
 0x145   : > { %v3970_v35 = vpop.xlane.xlu0 %991  ;;  %v1293_v38 = vrot.slane %v1010_v2, %v3963_v27 }
 0x148   : > { %v950_v36 = vpop.xlane.xlu1 %949 }
 0x149   : > { %v1013_v37 = vpop.xlane.xlu0 %1012  ;;  %v1213_v7 = vrot.slane %v950_v36, %v3963_v27 }
 0x14a   : > { %v1297_v39 = vrot.slane %v1013_v37, %v3963_v27 }
 0x14b   : > { %v1457_v22 = vsel %vm1456_vm6, %v1213_v7, %v1455_v21 }
 0x14c   : > { %v3975_v40 = vsel %vm1450_vm3, %v1297_v39, %v1293_v38  ;;  %v3977_v41 = vpop.xlane.xlu1 %994 }
 0x14d   : > { %v974_v42 = vpop.xlane.xlu0 %973 }
 0x14e   : > { %v1245_v9 = vrot.slane %v974_v42, %v3963_v27 }
 0x150   : > { %v1034_v43 = vpop.xlane.xlu1 %1033  ;;  %v1467_v23 = vsel %vm1456_vm6, %v1245_v9, %v1466_v16 }
 0x151   : > { %v3979_v44 = vpop.xlane.xlu0 %1015  ;;  %v1325_v47 = vrot.slane %v1034_v43, %v3963_v27 }
 0x152   : > { %v1301_v7 = vrot.slane %v3979_v44, %v3963_v27 }
 0x154   : > { %v953_v45 = vpop.xlane.xlu1 %952  ;;  %v1479_v17 = vsel %vm1452_vm4, %v1301_v7, %v3975_v40 }
 0x155   : > { %v1037_v46 = vpop.xlane.xlu0 %1036  ;;  %v1217_v14 = vrot.slane %v953_v45, %v3963_v27 }
 0x156   : > { %v1329_v48 = vrot.slane %v1037_v46, %v3963_v27  ;;  %v1269_v46 = vrot.slane %v3970_v35, %v3963_v27 }
 0x157   : > { %v1459_v28 = vsel %vm1458_vm7, %v1217_v14, %v1457_v22 }
 0x158   : > { %v3984_v49 = vsel %vm1450_vm3, %v1329_v48, %v1325_v47  ;;  %v3986_v50 = vpop.xlane.xlu1 %997  ;;  %v1273_v47 = vrot.slane %v3977_v41, %v3963_v27  ;;  %v1472_v62 = vsel %vm1452_vm4, %v1269_v46, %v3968_v32 }
 0x159   : > { %v977_v51 = vpop.xlane.xlu0 %976  ;;  %v1277_v48 = vrot.slane %v3986_v50, %v3963_v27 }
 0x15a   : > { %v1249_v15 = vrot.slane %v977_v51, %v3963_v27  ;;  %v1473_v35 = vsel %vm1454_vm5, %v1273_v47, %v1472_v62 }
 0x15b   : > { %v1474_v0 = vsel %vm1456_vm6, %v1277_v48, %v1473_v35 }
 0x15c   : > { %v3988_v52 = vpop.xlane.xlu1 %1039  ;;  %v1468_v29 = vsel %vm1458_vm7, %v1249_v15, %v1467_v23 }
 0x15d   : > { %v3990_v53 = vpop.xlane.xlu0 %1018 }
 0x15e   : > { %v1305_v9 = vrot.slane %v3990_v53, %v3963_v27 }
 0x160   : > { %v3992_v54 = vpop.xlane.xlu1 %1060 }
 0x161   : > { %v3994_v55 = vpop.xlane.xlu0 %1057 }
 0x164   : > { %v980_v56 = vpop.xlane.xlu1 %979 }
 0x165   : > { %v956_v57 = vpop.xlane.xlu0 %955  ;;  %v1253_v19 = vrot.slane %v980_v56, %v3963_v27 }
 0x166   : > { %v1221_v20 = vrot.slane %v956_v57, %v3963_v27 }
 0x167   : > { %v1469_v33 = vsel %vm1460_vm8, %v1253_v19, %v1468_v29  ;;  %v1480_v19 = vsel %vm1454_vm5, %v1305_v9, %v1479_v17 }
 0x168   : > { %v3996_v58 = vpop.xlane.xlu1 %1021  ;;  %v1461_v34 = vsel %vm1460_vm8, %v1221_v20, %v1459_v28 }
 0x169   : > { %v3998_v59 = vpop.xlane.xlu0 %1000  ;;  %v1309_v12 = vrot.slane %v3996_v58, %v3963_v27 }
 0x16a   : > { %v1281_v57 = vrot.slane %v3998_v59, %v3963_v27 }
 0x16b   : > { %v1481_v44 = vsel %vm1456_vm6, %v1309_v12, %v1480_v19 }
 0x16c   : > { %v4000_v60 = vpop.xlane.xlu1 %1063  ;;  %v1475_v50 = vsel %vm1458_vm7, %v1281_v57, %v1474_v0 }
 0x16d   : > { %v4002_v61 = vpop.xlane.xlu0 %1042 }
 0x16e   : > { %v1337_v28 = vrot.slane %v4002_v61, %v3963_v27  ;;  %v1361_v61 = vrot.slane %v3992_v54, %v3963_v27 }
 0x170   : > { %v4014_v10 = vpop.xlane.xlu1 %1084 }
 0x171   : > { %v4016_v11 = vpop.xlane.xlu0 %1081  ;;  %v1393_v35 = vrot.slane %v4014_v10, %v3963_v27 }
 0x174   : > { %v983_v25 = vpop.xlane.xlu1 %982 }
 0x175   : > { %v959_v26 = vpop.xlane.xlu0 %958  ;;  %v1257_v30 = vrot.slane %v983_v25, %v3963_v27 }
 0x176   : > { %v1225_v31 = vrot.slane %v959_v26, %v3963_v27  ;;  %v1333_v26 = vrot.slane %v3988_v52, %v3963_v27 }
 0x177   : > { %v1470_v2 = vsel %vm1462_vm9, %v1257_v30, %v1469_v33 }
 0x178   : > { %v1463_v36 = vsel %vm1462_vm9, %v1225_v31, %v1461_v34  ;;  %v1025_v37 = vpop.xlane.xlu1 %1024  ;;  %v1525_v39 = vsel %vm1521_vm10, %v1470_v2, 0.0  ;;  %v1486_v34 = vsel %vm1452_vm4, %v1333_v26, %v3984_v49  ;;  %v1365_v49 = vrot.slane %v4000_v60, %v3963_v27 }
 0x179   : > { %v1004_v38 = vpop.xlane.xlu0 %1003  ;;  %v1522_v42 = vsel %vm1521_vm10, %v1463_v36, 0.0  ;;  %1526 = vadd.xlane.f32.xlu1 %v1525_v39  ;;  %v1313_v15 = vrot.slane %v1025_v37, %v3963_v27  ;;  %v1487_v36 = vsel %vm1454_vm5, %v1337_v28, %v1486_v34  ;;  %v1357_v39 = vrot.slane %v3994_v55, %v3963_v27 }
 0x17a   : > { %1523 = vadd.xlane.f32.xlu0 %v1522_v42  ;;  %v1285_v63 = vrot.slane %v1004_v38, %v3963_v27  ;;  %v1389_v60 = vrot.slane %v4016_v11, %v3963_v27 }
 0x17b   : > { %v1482_v53 = vsel %vm1458_vm7, %v1313_v15, %v1481_v44 }
 0x17c   : > { %v4040_v43 = vpop.xlane.xlu1 %1066  ;;  %v1476_v4 = vsel %vm1460_vm8, %v1285_v63, %v1475_v50  ;;  %v1492_v63 = vsel %vm1450_vm3, %v1361_v61, %v1357_v39  ;;  %v1554_v61 = vld [vmem:[%s4388_s1] sm:$0xff]  ;;  %v1555_v39 = vld [vmem:[%s4388_s1 + $0x8] sm:$0xff] }
 0x17d   : > { %v1046_v45 = vpop.xlane.xlu0 %1045  ;;  %v1369_v47 = vrot.slane %v4040_v43, %v3963_v27  ;;  %v1493_v43 = vsel %vm1452_vm4, %v1365_v49, %v1492_v63 }
 0x17e   : > { %v1341_v29 = vrot.slane %v1046_v45, %v3963_v27 }
 0x180   : > { %v4048_v51 = vpop.xlane.xlu1 %1105  ;;  %v1488_v37 = vsel %vm1456_vm6, %v1341_v29, %v1487_v36 }
 0x181   : > { %v4050_v56 = vpop.xlane.xlu0 %1087  ;;  %v1421_v19 = vrot.slane %v4048_v51, %v3963_v27 }
 0x184   : > { %v1007_v41 = vpop.xlane.xlu1 %1006 }
 0x185   : > { %v4059_v1 = vpop.xlane.xlu0 %1108  ;;  %v1289_v3 = vrot.slane %v1007_v41, %v3963_v27  ;;  %v1397_v41 = vrot.slane %v4050_v56, %v3963_v27 }
 0x186   : > { %v1425_v12 = vrot.slane %v4059_v1, %v3963_v27 }
 0x187   : > { %v1477_v59 = vsel %vm1462_vm9, %v1289_v3, %v1476_v4  ;;  %v1494_v3 = vsel %vm1454_vm5, %v1369_v47, %v1493_v43  ;;  %v1556_v47 = vld [vmem:[%s4388_s1 + $0x10] sm:$0xff] }
 0x188   : > { %v1049_v5 = vpop.xlane.xlu1 %1048  ;;  %v1528_v32 = vsel %vm1521_vm10, %v1477_v59, 0.0 }
 0x189   : > { %v1028_v6 = vpop.xlane.xlu0 %1027  ;;  %1529 = vadd.xlane.f32.xlu0 %v1528_v32  ;;  %v1345_v33 = vrot.slane %v1049_v5, %v3963_v27 }
 0x18a   : > { %v1317_v18 = vrot.slane %v1028_v6, %v3963_v27  ;;  %v1499_v6 = vsel %vm1450_vm3, %v1393_v35, %v1389_v60  ;;  %v1558_v60 = vld [vmem:[%s4388_s1 + $0x20] sm:$0xff] }
 0x18b   : > { %v1489_v42 = vsel %vm1458_vm7, %v1345_v33, %v1488_v37  ;;  %v1500_v9 = vsel %vm1452_vm4, %v1397_v41, %v1499_v6  ;;  %v1639_v41 = vand.u32 4294901760, %v1558_v60 }
 0x18c   : > { %v4072_v13 = vpop.xlane.xlu1 %1090  ;;  %v1483_v21 = vsel %vm1460_vm8, %v1317_v18, %v1482_v53 }
 0x18d   : > { %v1070_v14 = vpop.xlane.xlu0 %1069  ;;  %v1401_v4 = vrot.slane %v4072_v13, %v3963_v27 }
 0x18e   : > { %v1373_v57 = vrot.slane %v1070_v14, %v3963_v27 }
 0x18f   : > { %v1501_v15 = vsel %vm1454_vm5, %v1401_v4, %v1500_v9  ;;  %v1739_v4 = vsub.f32 %v1558_v60, %v1639_v41  ;;  %v1602_v60 = vadd.s32 4294967256, %v3959_v24 }
 0x190   : > { %v1031_v20 = vpop.xlane.xlu1 %1030  ;;  %v1495_v10 = vsel %vm1456_vm6, %v1373_v57, %v1494_v3 }
 0x191   : > { %v4080_v16 = vpop.xlane.xlu0 %1111  ;;  %v1321_v58 = vrot.slane %v1031_v20, %v3963_v27 }
 0x192   : > { %v1429_v17 = vrot.slane %v4080_v16, %v3963_v27 }
 0x193   : > { %v1484_v22 = vsel %vm1462_vm9, %v1321_v58, %v1483_v21 }
 0x194   : > { %v1073_v23 = vpop.xlane.xlu1 %1072  ;;  %v1531_v40 = vsel %vm1521_vm10, %v1484_v22, 0.0 }
 0x195   : > { %v1052_v25 = vpop.xlane.xlu0 %1051  ;;  %1532 = vadd.xlane.f32.xlu1 %v1531_v40  ;;  %v1377_v0 = vrot.slane %v1073_v23, %v3963_v27  ;;  %v1506_v23 = vsel %vm1450_vm3, %v1425_v12, %v1421_v19  ;;  %vm1623_vm3 = vcmask 523264  }
 0x196   : > { %v1349_v2 = vrot.slane %v1052_v25, %v3963_v27  ;;  %v1507_v40 = vsel %vm1452_vm4, %v1429_v17, %v1506_v23  ;;  %vm2620_vm4 = vcmask 516096  }
 0x197   : > { %v1496_v32 = vsel %vm1458_vm7, %v1377_v0, %v1495_v10  ;;  %v1559_v0 = vld [vmem:[%s4388_s1 + $0x28] sm:$0xff] }
 0x198   : > { %v4092_v30 = vpop.xlane.xlu1 %1114  ;;  %v1490_v46 = vsel %vm1460_vm8, %v1349_v2, %v1489_v42  ;;  %v1627_v42 = vand.u32 4294901760, %v1554_v61 }
 0x199   : > { %v1094_v31 = vpop.xlane.xlu0 %1093  ;;  %v1433_v44 = vrot.slane %v4092_v30, %v3963_v27 }
 0x19a   : > { %v1405_v59 = vrot.slane %v1094_v31, %v3963_v27  ;;  %v4171_v49 = vsub.f32 %v1554_v61, %v1627_v42 }
 0x19b   : > { %v1508_v28 = vsel %vm1454_vm5, %v1433_v44, %v1507_v40 }
 0x19c   : > { %v1076_v52 = vpop.xlane.xlu1 %1075  ;;  %v1502_v20 = vsel %vm1456_vm6, %v1405_v59, %v1501_v15  ;;  %v1560_v59 = vld [vmem:[%s4388_s1 + $0x30] sm:$0xff]  ;;  %v1712_v15 = vand.u32 4294901760, %v4171_v49 }
 0x19d   : > { %v1055_v38 = vpop.xlane.xlu0 %1054  ;;  %v1381_v50 = vrot.slane %v1076_v52, %v3963_v27  ;;  %v1645_v6 = vand.u32 4294901760, %v1560_v59 }
 0x19e   : > { %v1353_v45 = vrot.slane %v1055_v38, %v3963_v27  ;;  %v1713_v19 = vsub.f32 %v4171_v49, %v1712_v15 }
 0x19f   : > { %v1497_v14 = vsel %vm1460_vm8, %v1381_v50, %v1496_v32  ;;  %v1642_v50 = vand.u32 4294901760, %v1559_v0 }
 0x1a0   : > { %v1491_v48 = vsel %vm1462_vm9, %v1353_v45, %v1490_v46  ;;  %v1118_v54 = vpop.xlane.xlu1 %1117  ;;  %v1630_v45 = vand.u32 4294901760, %v1555_v39 }
 0x1a1   : > { %v1097_v62 = vpop.xlane.xlu0 %1096  ;;  %v1534_v55 = vsel %vm1521_vm10, %v1491_v48, 0.0  ;;  %v1437_v21 = vrot.slane %v1118_v54, %v3963_v27  ;;  %v1557_v48 = vld [vmem:[%s4388_s1 + $0x18] sm:$0xff]  ;;  %v1633_v54 = vand.u32 4294901760, %v1556_v47  ;;  %v1746_v10 = vsub.f32 %v1559_v0, %v1642_v50 }
 0x1a2   : > { %1535 = vadd.xlane.f32.xlu0 %v1534_v55  ;;  %v1409_v7 = vrot.slane %v1097_v62, %v3963_v27  ;;  %v4173_v46 = vsub.f32 %v1555_v39, %v1630_v45  ;;  %v1636_v62 = vand.u32 4294901760, %v1557_v48  ;;  %v3234_v55 = vmov 0.0|0.0  }
 0x1a3   : > { %v1509_v33 = vsel %vm1456_vm6, %v1437_v21, %v1508_v28  ;;  %2958 = vmatprep.subr.bf16.mxu0 %v3234_v55  ;;  %2934 = vmatprep.subr.bf16.mxu1 %v3234_v55  ;;  %v4185_v63 = vsub.f32 %v1556_v47, %v1633_v54  ;;  %v4198_v3 = vpack.c.bf16 %v1630_v45, %v1627_v42  ;;  %v1747_v40 = vand.u32 4294901760, %v1746_v10 }
 0x1a4   : > { %v1100_v11 = vpop.xlane.xlu1 %1099  ;;  %v1503_v22 = vsel %vm1458_vm7, %v1409_v7, %v1502_v20  ;;  %v2959_v57 = vpack.c.bf16 %v4173_v46, %v4171_v49  ;;  %v4187_v35 = vsub.f32 %v1557_v48, %v1636_v62  ;;  %v4209_v7 = vpack.c.bf16 %v1636_v62, %v1633_v54 }
 0x1a5   : > { %v1079_v5 = vpop.xlane.xlu0 %1078  ;;  %v1413_v13 = vrot.slane %v1100_v11, %v3963_v27  ;;  %v1561_v11 = vld [vmem:[%s4388_s1 + $0x38] sm:$0xff]  ;;  %2936 = vmatpush3.bf16.msra.mxu1 %v4198_v3  ;;  %v1719_v17 = vand.u32 4294901760, %v4173_v46  ;;  %v1714_v20 = vand.u32 4294901760, %v1713_v19  ;;  %v1574_v48 = vadd.s32 4294967288, %v3959_v24 }
 0x1a6   : > { %v1385_v56 = vrot.slane %v1079_v5, %v3963_v27  ;;  %2960 = vmatpush3.bf16.msra.mxu0 %v2959_v57  ;;  %v2962_v43 = vpack.c.bf16 %v4187_v35, %v4185_v63  ;;  %v2965_v5 = vpack.c.bf16 %v1746_v10, %v1739_v4  ;;  %v1648_v32 = vand.u32 4294901760, %v1561_v11  ;;  %2937 = vmatprep.subr.bf16.mxu1 %v3234_v55 }
 0x1a7   : > { %v1504_v25 = vsel %vm1460_vm8, %v1413_v13, %v1503_v22  ;;  %2961 = vmatprep.subr.bf16.mxu0 %v3234_v55  ;;  %v4213_v13 = vpack.c.bf16 %v1642_v50, %v1639_v41  ;;  %v1720_v44 = vsub.f32 %v4173_v46, %v1719_v17  ;;  %v1581_v54 = vadd.s32 4294967280, %v3959_v24 }
 0x1a8   : > { %v1498_v18 = vsel %vm1462_vm9, %v1385_v56, %v1497_v14  ;;  %v1103_v1 = vpop.xlane.xlu1 %1102  ;;  %v1753_v56 = vsub.f32 %v1560_v59, %v1645_v6  ;;  %v1760_v9 = vsub.f32 %v1561_v11, %v1648_v32  ;;  %v3236_v14 = vmov 0.0  }
 0x1a9   : > { %v1121_v53 = vpop.xlane.xlu0 %1120  ;;  %v1537_v58 = vsel %vm1521_vm10, %v1498_v18, 0.0  ;;  %v1417_v16 = vrot.slane %v1103_v1, %v3963_v27  ;;  %2939 = vmatpush3.bf16.msra.mxu1 %v4209_v7  ;;  %2844 = vmatprep.mubr.msk.f32.mxu0 %vm3235_vm11, %v3236_v14  ;;  %v4225_v18 = vpack.c.bf16 %v1648_v32, %v1645_v6  ;;  %v1721_v1 = vand.u32 4294901760, %v1720_v44 }
 0x1aa   : > { %1538 = vadd.xlane.f32.xlu1 %v1537_v58  ;;  %v1441_v51 = vrot.slane %v1121_v53, %v3963_v27  ;;  %2963 = vmatpush3.bf16.msra.mxu0 %v2962_v43  ;;  %v2968_v12 = vpack.c.bf16 %v1760_v9, %v1753_v56  ;;  %v1726_v53 = vand.u32 4294901760, %v4185_v63  ;;  %v1733_v58 = vand.u32 4294901760, %v4187_v35 }
 0x1ab   : > { %v1505_v26 = vsel %vm1462_vm9, %v1417_v16, %v1504_v25  ;;  %2964 = vmatprep.subr.bf16.mxu0 %v3234_v55  ;;  %2940 = vmatprep.subr.bf16.mxu1 %v3234_v55  ;;  %v4233_v21 = vpack.c.bf16 %v1721_v1, %v1714_v20  ;;  %v1740_v25 = vand.u32 4294901760, %v1739_v4  ;;  %v1577_v0 = vsub.s32 %v1574_v48, %v3633_v8 }
 0x1ac   : > { %v1127_v30 = vpop.xlane.xlu1 %1126  ;;  %v1540_v31 = vsel %vm1521_vm10, %v1505_v26, 0.0  ;;  %v1510_v36 = vsel %vm1458_vm7, %v1441_v51, %v1509_v33  ;;  %2806 = vmatprep.mubr.msk.f32.mxu1 %vm3235_vm11, %v3236_v14  ;;  %v1727_v22 = vsub.f32 %v4185_v63, %v1726_v53  ;;  %v1734_v16 = vsub.f32 %v4187_v35, %v1733_v58 }
 0x1ad   : > { %v1124_v29 = vpop.xlane.xlu0 %1123  ;;  %v1449_v2 = vrot.slane %v1127_v30, %v3963_v27  ;;  %1541 = vadd.xlane.f32.xlu0 %v1540_v31  ;;  %2942 = vmatpush3.bf16.msra.mxu1 %v4213_v13  ;;  %v1741_v28 = vsub.f32 %v1739_v4, %v1740_v25  ;;  %v1754_v33 = vand.u32 4294901760, %v1753_v56  ;;  %v4245_v42 = vpack.c.bf16 %v1733_v58, %v1726_v53 }
 0x1ae   : > { %v1445_v34 = vrot.slane %v1124_v29, %v3963_v27  ;;  %2966 = vmatpush3.bf16.msra.mxu0 %v2965_v5  ;;  %2943 = vmatprep.subr.bf16.mxu1 %v3234_v55  ;;  %v1728_v23 = vand.u32 4294901760, %v1727_v22  ;;  %v1735_v51 = vand.u32 4294901760, %v1734_v16  ;;  %v1748_v29 = vsub.f32 %v1746_v10, %v1747_v40 }
 0x1af   : > { %2967 = vmatprep.subr.bf16.mxu0 %v3234_v55  ;;  %v1742_v30 = vand.u32 4294901760, %v1741_v28  ;;  %v4247_v45 = vpack.c.bf16 %v1747_v40, %v1740_v25  ;;  %v1588_v63 = vadd.s32 4294967272, %v3959_v24  ;;  %v1595_v35 = vadd.s32 4294967264, %v3959_v24 }
 0x1b0   : > { %v1511_v37 = vsel %vm1460_vm8, %v1445_v34, %v1510_v36  ;;  %v4237_v26 = vpack.c.bf16 %v1735_v51, %v1728_v23  ;;  %v1749_v31 = vand.u32 4294901760, %v1748_v29  ;;  %v1761_v34 = vand.u32 4294901760, %v1760_v9 }
 0x1b1   : > { %v1512_v52 = vsel %vm1462_vm9, %v1449_v2, %v1511_v37  ;;  %2945 = vmatpush3.bf16.msra.mxu1 %v4225_v18  ;;  %v1755_v36 = vsub.f32 %v1753_v56, %v1754_v33  ;;  %v1584_v4 = vsub.s32 %v1581_v54, %v3633_v8  ;;  %v1609_v11 = vadd.s32 4294967248, %v3959_v24 }
 0x1b2   : > { %v1543_v38 = vsel %vm1521_vm10, %v1512_v52, 0.0  ;;  %2969 = vmatpush3.bf16.msra.mxu0 %v2968_v12  ;;  %2946 = vmatprep.subr.bf16.mxu1 %v3234_v55  ;;  %v4239_v2 = vpack.c.bf16 %v1749_v31, %v1742_v30  ;;  %v1762_v37 = vsub.f32 %v1760_v9, %v1761_v34  ;;  %v4241_v52 = vpack.c.bf16 %v1719_v17, %v1712_v15 }
 0x1b3   : > { %1544 = vadd.xlane.f32.xlu1 %v1543_v38  ;;  %2970 = vmatprep.subr.bf16.mxu0 %v3234_v55  ;;  %v1756_v38 = vand.u32 4294901760, %v1755_v36  ;;  %v4249_v49 = vpack.c.bf16 %v1761_v34, %v1754_v33  ;;  %v1591_v5 = vsub.s32 %v1588_v63, %v3633_v8  ;;  %v1598_v32 = vsub.s32 %v1595_v35, %v3633_v8 }
 0x1b4   : > { %v1763_v61 = vand.u32 4294901760, %v1762_v37  ;;  %v1605_v9 = vsub.s32 %v1602_v60, %v3633_v8  ;;  %v1616_v44 = vadd.s32 4294967240, %v3959_v24  ;;  %v1612_v1 = vsub.s32 %v1609_v11, %v3633_v8 }
 0x1b6   : > { %v4243_v39 = vpack.c.bf16 %v1763_v61, %v1756_v38  ;;  %v1619_v51 = vsub.s32 %v1616_v44, %v3633_v8 }
 0x206   : > { %v1527_v47 = vpop.xlane.xlu1 %1526 }
 0x207   : > { %v1524_v46 = vpop.xlane.xlu0 %1523  ;;  %v1547_v43 = vmul.f32 0.003125, %v1527_v47 }
 0x208   : > { %v1546_v41 = vmul.f32 0.003125, %v1524_v46 }
 0x209   : > { %v1578_v12 = vrot.slane %v1547_v43, %v1577_v0 }
 0x20a   : > { %v1573_v15 = vrot.slane %v1546_v41, %v3963_v27 }
 0x20c   : > { %v1580_v16 = vsel %vm1579_vm12, %v1578_v12, %v1573_v15 }
 0x216   : > { %v1530_v57 = vpop.xlane.xlu0 %1529 }
 0x217   : > { %v1548_v10 = vmul.f32 0.003125, %v1530_v57 }
 0x219   : > { %v1585_v20 = vrot.slane %v1548_v10, %v1584_v4 }
 0x21b   : > { %v1587_v25 = vsel %vm1586_vm13, %v1585_v20, %v1580_v16 }
 0x222   : > { %v1533_v62 = vpop.xlane.xlu1 %1532 }
 0x223   : > { %v1549_v6 = vmul.f32 0.003125, %v1533_v62 }
 0x225   : > { %v1592_v58 = vrot.slane %v1549_v6, %v1591_v5 }
 0x227   : > { %v1594_v28 = vsel %vm1593_vm14, %v1592_v58, %v1587_v25 }
 0x22f   : > { %v1536_v50 = vpop.xlane.xlu0 %1535 }
 0x230   : > { %v1550_v56 = vmul.f32 0.003125, %v1536_v50 }
 0x232   : > { %v1599_v22 = vrot.slane %v1550_v56, %v1598_v32 }
 0x234   : > { %v1601_v29 = vsel %vm1600_vm15, %v1599_v22, %v1594_v28 }
 0x237   : > { %v1539_v59 = vpop.xlane.xlu1 %1538 }
 0x238   : > { %v1551_v17 = vmul.f32 0.003125, %v1539_v59 }
 0x23a   : > { %v1542_v19 = vpop.xlane.xlu0 %1541  ;;  %v1606_v23 = vrot.slane %v1551_v17, %v1605_v9 }
 0x23b   : > { %v1552_v53 = vmul.f32 0.003125, %v1542_v19 }
 0x23c   : > { %v1608_v30 = vsel %vm1607_vm0, %v1606_v23, %v1601_v29 }
 0x23d   : > { %v1613_v27 = vrot.slane %v1552_v53, %v1612_v1 }
 0x23f   : > { %v1615_v33 = vsel %vm1614_vm1, %v1613_v27, %v1608_v30 }
 0x240   : > { %v1545_v40 = vpop.xlane.xlu1 %1544 }
 0x241   : > { %v1553_v24 = vmul.f32 0.003125, %v1545_v40 }
 0x243   : > { %v1620_v31 = vrot.slane %v1553_v24, %v1619_v51 }
 0x245   : > { %v1622_v34 = vsel %vm1621_vm2, %v1620_v31, %v1615_v33 }
 0x246   : > { %v1624_v36 = vsel %vm1623_vm3, %v1622_v34, 0 }
 0x247   : > { %v1699_v37 = vand.u32 4294901760, %v1624_v36 }
 0x249   : > { %v1700_v38 = vsub.f32 %v1624_v36, %v1699_v37 }
 0x24b   : > { %2845 = vmatmul.mubr.f32.vlgmr.msra.gmra.mrb[0].mxu0 %v1700_v38  ;;  %v1701_v61 = vand.u32 4294901760, %v1700_v38 }
 0x24c   : > { %2972 = vmatpush3.bf16.msra.mxu0 %v4198_v3  ;;  %2863 = vmatprep.mubr.msk.f32.mxu0 %vm3235_vm11, %v3236_v14 }
 0x24d   : > { %2973 = vmatprep.subr.bf16.mxu0 %v3234_v55  ;;  %v1702_v8 = vsub.f32 %v1700_v38, %v1701_v61 }
 0x24f   : > { %v1703_v46 = vand.u32 4294901760, %v1702_v8 }
 0x250   : > { %2975 = vmatpush3.bf16.msra.mxu0 %v4209_v7 }
 0x251   : > { %2807 = vmatmul.mubr.f32.vlgmr.msra.gmra.mrb[0].mxu1 %v1703_v46  ;;  %2976 = vmatprep.subr.bf16.mxu0 %v3234_v55 }
 0x252   : > { %2948 = vmatpush3.bf16.msra.mxu1 %v4233_v21  ;;  %2825 = vmatprep.mubr.msk.f32.mxu1 %vm3235_vm11, %v3236_v14 }
 0x253   : > { %2949 = vmatprep.subr.bf16.mxu1 %v3234_v55 }
 0x254   : > { %2978 = vmatpush3.bf16.msra.mxu0 %v4213_v13 }
 0x255   : > { %2979 = vmatprep.subr.bf16.mxu0 %v3234_v55 }
 0x256   : > { %2951 = vmatpush3.bf16.msra.mxu1 %v4237_v26 }
 0x257   : > { %2952 = vmatprep.subr.bf16.mxu1 %v3234_v55 }
 0x258   : > { %2981 = vmatpush3.bf16.msra.mxu0 %v4225_v18 }
 0x259   : > { %2982 = vmatprep.subr.bf16.mxu0 %v3234_v55 }
 0x25a   : > { %2954 = vmatpush3.bf16.msra.mxu1 %v4239_v2 }
 0x25b   : > { %2864 = vmatmul.mubr.f32.vlgmr.msra.gmra.mrb[0].mxu0 %v1701_v61  ;;  %2955 = vmatprep.subr.bf16.mxu1 %v3234_v55 }
 0x25c   : > { %2984 = vmatpush3.bf16.msra.mxu0 %v4241_v52  ;;  %2882 = vmatprep.mubr.msk.f32.mxu0 %vm3235_vm11, %v3236_v14 }
 0x25d   : > { %2985 = vmatprep.subr.bf16.mxu0 %v3234_v55 }
 0x25e   : > { %2957 = vmatpush3.bf16.msra.mxu1 %v4243_v39 }
 0x25f   : > { %2904 = vmatprep.subr.mxu1 %v3236_v14 }
 0x260   : > { %2987 = vmatpush3.bf16.msra.mxu0 %v4245_v42 }
 0x261   : > { %2826 = vmatmul.mubr.f32.vlgmr.msra.gmra.mrb[0].mxu1 %v1699_v37  ;;  %2988 = vmatprep.subr.bf16.mxu0 %v3234_v55 }
 0x262   : > { %2906 = vmatprep.mubr.msk.f32.mxu1 %vm3235_vm11, %v3236_v14 }
 0x264   : > { %2990 = vmatpush3.bf16.msra.mxu0 %v4247_v45 }
 0x265   : > { %2991 = vmatprep.subr.bf16.mxu0 %v3234_v55 }
 0x268   : > { %2993 = vmatpush3.bf16.msra.mxu0 %v4249_v49 }
 0x269   : > { %2994 = vmatprep.subr.bf16.mxu0 %v3234_v55 }
 0x26b   : > { %2883 = vmatmul.mubr.f32.vlgmr.msra.gmra.mrb[0].mxu0 %v1699_v37 }
 0x26c   : > { %2996 = vmatpush3.bf16.msra.mxu0 %v4198_v3  ;;  %2901 = vmatprep.mubr.msk.f32.mxu0 %vm3235_vm11, %v3236_v14  ;;  %v2164_v3 = vld [vmem:[%s4389_s2] sm:$0xff] }
 0x26d   : > { %2997 = vmatprep.subr.bf16.mxu0 %v3234_v55  ;;  %v2169_v21 = vand.u32 4294901760, %v2164_v3 }
 0x26f   : > { %2905 = vmatpush3.msra.mxu1 %v2169_v21  ;;  %v2246_v42 = vsub.f32 %v2164_v3, %v2169_v21 }
 0x270   : > { %2999 = vmatpush3.bf16.msra.mxu0 %v4209_v7  ;;  %2909 = vmatprep.subr.mxu1 %v3236_v14 }
 0x271   : > { %3000 = vmatprep.subr.bf16.mxu0 %v3234_v55  ;;  %v2247_v45 = vand.u32 4294901760, %v2246_v42 }
 0x273   : > { %v2248_v47 = vsub.f32 %v2246_v42, %v2247_v45 }
 0x274   : > { %3002 = vmatpush3.bf16.msra.mxu0 %v4213_v13 }
 0x275   : > { %3003 = vmatprep.subr.bf16.mxu0 %v3234_v55  ;;  %v2249_v54 = vand.u32 4294901760, %v2248_v47 }
 0x278   : > { %3005 = vmatpush3.bf16.msra.mxu0 %v4225_v18 }
 0x27b   : > { %2902 = vmatmul.mubr.f32.vlgmr.msra.gmra.mrb[0].mxu0 %v1699_v37 }
 0x334   : > { %v1816_v26 = vpop.f32.mrb[0].mxu1 }
 0x335   : > { %v2827_v2 = vpop.f32.mrb[1].mxu1 }
 0x34e   : > { %v2159_v7 = vpop.f32.mrb[0].mxu0 }
 0x34f   : > { %v3006_v52 = vadd.f32 %v2159_v7, %v1816_v26  ;;  %v2903_v39 = vpop.f32.mrb[1].mxu0 }
 0x351   : > { %v2163_v13 = vmax.f32 %v3006_v52, 0.0 }
 0x353   : > { %v2166_v55 = vsel %vm1521_vm10, %v2163_v13, 0 }
 0x354   : > { %v2234_v18 = vand.u32 4294901760, %v2166_v55 }
 0x356   : > { %v2235_v49 = vsub.f32 %v2166_v55, %v2234_v18 }
 0x358   : > { %v2236_v48 = vand.u32 4294901760, %v2235_v49 }
 0x35a   : > { %v2237_v57 = vsub.f32 %v2235_v49, %v2236_v48 }
 0x35c   : > { %v2238_v62 = vand.u32 4294901760, %v2237_v57 }
 0x35e   : > { %2907 = vmatmul.mubr.f32.vlgmr.msra.gmra.mrb[2].mxu1 %v2238_v62 }
 0x35f   : > { %2910 = vmatpush3.msra.mxu1 %v2249_v54  ;;  %2911 = vmatprep.mubr.msk.f32.mxu1 %vm3235_vm11, %v3236_v14 }
 0x360   : > { %2914 = vmatprep.subr.mxu1 %v3236_v14 }
 0x366   : > { %2912 = vmatmul.mubr.f32.vlgmr.msra.gmra.mrb[2].mxu1 %v2234_v18 }
 0x367   : > { %2915 = vmatpush3.msra.mxu1 %v2246_v42  ;;  %2916 = vmatprep.mubr.msk.f32.mxu1 %vm3235_vm11, %v3236_v14 }
 0x368   : > { %2919 = vmatprep.subr.mxu1 %v3236_v14 }
 0x36e   : > { %2917 = vmatmul.mubr.f32.vlgmr.msra.gmra.mrb[2].mxu1 %v2235_v49 }
 0x36f   : > { %2920 = vmatpush3.msra.mxu1 %v2169_v21  ;;  %2921 = vmatprep.mubr.msk.f32.mxu1 %vm3235_vm11, %v3236_v14 }
 0x370   : > { %2924 = vmatprep.subr.mxu1 %v3236_v14 }
 0x376   : > { %2922 = vmatmul.mubr.f32.vlgmr.msra.gmra.mrb[2].mxu1 %v2236_v48 }
 0x377   : > { %2925 = vmatpush3.msra.mxu1 %v2247_v45  ;;  %2926 = vmatprep.mubr.msk.f32.mxu1 %vm3235_vm11, %v3236_v14 }
 0x378   : > { %2929 = vmatprep.subr.mxu1 %v3236_v14 }
 0x37e   : > { %2927 = vmatmul.mubr.f32.vlgmr.msra.gmra.mrb[2].mxu1 %v2234_v18 }
 0x37f   : > { %2930 = vmatpush3.msra.mxu1 %v2169_v21  ;;  %2931 = vmatprep.mubr.msk.f32.mxu1 %vm3235_vm11, %v3236_v14 }
 0x386   : > { %2932 = vmatmul.mubr.f32.vlgmr.msra.gmra.mrb[2].mxu1 %v2234_v18 }
 0x459   : > { %v2610_v63 = vpop.f32.mrb[2].mxu1 }
 0x45a   : > { %v2720_v35 = vmul.f32 -1.442695, %v2610_v63  ;;  %v2933_v60 = vpop.f32.mrb[3].mxu1 }
 0x45c   : > { %3117 = vpow2.f32 %v2720_v35 }
 0x466   : > { %v3118_v0 = vpop.eup %3117 }
 0x467   : > { %v2617_v43 = vadd.f32 1.0, %v3118_v0 }
 0x469   : > { %3119 = vrcp.f32 %v2617_v43 }
 0x473   : > { %v3120_v41 = vpop.eup %3119 }
 0x474   : > { %2621 = vst.msk [vmem:[%s3497_s11] sm:$0x1] %vm2620_vm4, %v3120_v41 }
 0x475 PF: > { %s2721_s9 = sshll.u32 %s3219_s18, 4  ;;  %s2635_s17 = sshll.u32 %s3497_s11, 4  ;;  %s2636_s17 = int_to_ptr.vmem [resolvable:$true] %s2635_s17 }
 0x476   : > { %s4331_s22 = scalar_lea.hbm %s4390_s3, %s2721_s9  ;;  %s2623_s23 = scalar_lea.sflag [#allocation5], %s468_s5 }
 0x477   : > { %s3121_s27 = scalar_lea.vmem %s2636_s17, 16  ;;  %s3237_s4 = smov [#allocation4]  }
 0x478   : > { %p3122_p5 = scmp.ne.s32.totalorder %s2636_s17, %s3121_s27  ;;  %s3125_s29 = sshll.u32 %s3237_s4, 4  ;;  %s3126_s29 = int_to_ptr.vmem [resolvable:$false] %s3125_s29 }
 0x479   : > { %s3127_s26 = scalar_lea.vmem %s3126_s29, 32  ;;  %p3128_p9 = scmp.lt.s32.totalorder %s2636_s17, %s3126_s29 }
 0x47a   : > { %p3123_p6 = pnand %p3122_p5, %p3330_p7  ;;  %p3129_p10 = scmp.lt.s32.totalorder %s3127_s26, %s3121_s27 }
 0x47c   : > { %p3124_p8 = pneg %p3123_p6  ;;  %p3130_p11 = por %p3129_p10, %p3128_p9 }
 0x47e   : > { %p3131_p13 = pnand %p3130_p11, %p3124_p8 }
 0x480   : > { %3134 = shalt.err (!%p3131_p13)
}
 0x481   : > { %s3135_s18 = scalar_lea.hbm %s4331_s22, 16  ;;  %s3139_s28 = scalar_lea.hbm %s4390_s3, 32 }
 0x482   : > { %p3136_p0 = scmp.ne.s32.totalorder %s4331_s22, %s3135_s18  ;;  %p3140_p3 = scmp.lt.u32.totalorder %s4331_s22, %s4390_s3 }
 0x483   : > { %p3141_p4 = scmp.lt.u32.totalorder %s3139_s28, %s3135_s18  ;;  %p3143_p6 = scmp.lt.u32.totalorder %s3135_s18, %s4331_s22 }
 0x484   : > { %p3137_p1 = pnand %p3136_p0, %p3330_p7 }
 0x485   : > { %p3142_p5 = por %p3141_p4, %p3140_p3 }
 0x486   : > { %p3138_p2 = pneg %p3137_p1 }
 0x487   : > { %p3144_p8 = por %p3143_p6, %p3142_p5 }
 0x489   : > { %p3145_p9 = pnand %p3144_p8, %p3138_p2 }
 0x48b   : > { %3148 = shalt.err (!%p3145_p9)
}
 0x48c   : > { %3026 = dma.vmem_to_hbm [thread:$0]  (%p3330_p7), %s2636_s17, 16, %s4331_s22, %s2623_s23  }
 0x48d PF: > { %p3032_p10 = scmp.ge.s32.totalorder %s3231_s21, 2  ;;  %s2647_s15 = sand.u32 1, %s3195_s12  }
 0x48e   : > { %s2648_s27 = scalar_lea.sflag [#allocation5], %s2647_s15 }
 0x48f   : > { %p3029_p11 = pnand %p3032_p10, %p3338_p12 }
 0x491   : > { %3190 = dma.done.wait (!%p3029_p11), %s2648_s27, 16  }
 0x492   : > { %3192 = vsyncadd (!%p3029_p11), %s2648_s27, 4294967280  ;;  %s16_s21 = sadd.s32 1, %s3231_s21   ;;  %s4396_s12 = smov %s3199_s13 }
 0x493   : > { %p13_p13 = scmp.ge.s32.totalorder %s16_s21, 8   ;;  %s4397_s13 = smov %s3203_s14 }
 0x494   : > { %s4398_s14 = smov %s3343_s7  ;;  %s4399_s15 = smov %s3211_s16 }
 0x495   : > { %s4400_s16 = smov %s3346_s8  ;;  %s4401_s17 = smov %s3223_s19 }
 0x496   : > { %s4402_s18 = smov %s3227_s20  ;;  %s4403_s19 = smov %s4406_s24 }
 0x497   : > { %s4404_s20 = smov %s4410_s25  ;;  %15 = sbr.rel (!%p13_p13) target bundleno = 6 (0x6), region = 118 }
 0x49e   :  { %2652 = vsyncpa [#allocation5], 1 }
 0x49f   :  { %2654 = vsyncpa [#allocation5 + $0x1], 1 }

</bundles_post_ra>
